<compile_context>
chip_gen: v5e
topology: v5e:2x2
jax: 0.10.0
libtpu: 0.0.40
codegen_flags: <defaults>
</compile_context>

<pallas_src>
import numpy as np
import jax
import jax.numpy as jnp
from jax.experimental import pallas as pl
from jax.experimental.pallas import tpu as pltpu

BOARD_X = 7                       # board width  (Connect4 columns)
BOARD_Y = 6                       # board height (Connect4 rows)
ACTION_SIZE = BOARD_X             # one action per column
NF = BOARD_X * BOARD_Y            # 42
HID = 2 * NF                      # 84
C_CONV = 18
NCH = C_CONV * NF                 # 756
OUT_LANES = 128                   # lane-dense packed output block width
EPS = 1e-5
NEG_SLOPE = 0.01                  # F.leaky_relu default
NEG_FILL = -1e30                  # padding bias for unused action lanes (f32 path)


def _lrelu(x):
    # Single VALU max instead of cmp+select (valid for 0 < slope < 1).
    return jnp.maximum(x, NEG_SLOPE * x)


# -------------------- conv-as-dense-matmul host constants -------------------


def _make_shift_tensor():
    """S[k, q, p] = 1 iff input cell q feeds output cell p for 3x3 tap k."""
    s = np.zeros((9, NF, NF), np.float32)
    for kh in range(3):
        for kw in range(3):
            k = kh * 3 + kw
            for h in range(BOARD_Y):
                for w in range(BOARD_X):
                    hi, wi = h + kh - 1, w + kw - 1
                    if 0 <= hi < BOARD_Y and 0 <= wi < BOARD_X:
                        s[k, hi * BOARD_X + wi, h * BOARD_X + w] = 1.0
    return s


_SHIFT = _make_shift_tensor()      # (9, 42, 42)

# Channel pooling operators (hoisted out of the kernel).  _POOL already folds
# the 1/42 spatial average so the kernel only multiplies by 1/N.
_POOL = (np.kron(np.eye(C_CONV, dtype=np.float32),
                 np.ones((NF, 1), np.float32)) / NF)          # (756, 18)
_POOL_T = np.kron(np.eye(C_CONV, dtype=np.float32),
                  np.ones((1, NF), np.float32))               # (18, 756)


# ----------------------------- fused kernel ---------------------------------


def fused_forward_kernel(x_ref, wconv_ref, pool_ref, poolt_ref, gbc_ref,
                         w1_ref, aux1_ref,
                         w2_ref, aux2_ref,
                         w3_ref, aux3_ref,
                         w4_ref, b4_ref,
                         out_ref):
    n = x_ref.shape[0]
    inv_n = 1.0 / n
    ones_row = jnp.ones((1, n), jnp.float32)   # batch reductions go to the MXU

    # ---- conv (bf16 dense matmul, f32 accumulation) ------------------------
    # Columns of y are channel-major (c*42 + h*7 + w) == PyTorch flatten order.
    y = jnp.dot(x_ref[...], wconv_ref[...],
                preferred_element_type=jnp.float32)                   # (N, 756)

    # ---- BatchNorm2d (training stats) folded into scale/shift --------------
    ysum = jnp.dot(ones_row, y, preferred_element_type=jnp.float32)       # (1, 756)
    ysq = jnp.dot(ones_row, y * y, preferred_element_type=jnp.float32)    # (1, 756)
    stacked = jnp.concatenate([ysum, ysq], axis=0)                        # (2, 756)
    ch = jnp.dot(jnp.dot(stacked, pool_ref[...],
                         preferred_element_type=jnp.float32),
                 poolt_ref[...], preferred_element_type=jnp.float32) * inv_n
    mean = ch[0:1, :]                                   # per-channel mean (broadcast)
    var = jnp.maximum(ch[1:2, :] - mean * mean, 0.0)    # clamp E[x^2]-E[x]^2
    gbc = gbc_ref[...]
    scale = gbc[0:1, :] * jax.lax.rsqrt(var + EPS)
    shift = gbc[1:2, :] - mean * scale
    # NOTE: the conv bias cancels exactly in training-mode BN (per-channel shift).
    s = _lrelu(y * scale + shift)                                      # (N, 756) f32
    s_bf = s.astype(jnp.bfloat16)                                      # single cast

    # ---- fused head layers: linear -> leaky_relu -> BN (folded) ------------
    # TODO(synk): F.dropout (training=True in the reference) is stochastic; it
    # is implemented here as identity (inference semantics).
    def lin_lrelu_bn(x_bf, w, aux):
        # aux rows: 0 = bias, 1 = gamma, 2 = beta
        z = jnp.dot(x_bf, w, preferred_element_type=jnp.float32) + aux[0:1, :]
        z = _lrelu(z)
        m = jnp.dot(ones_row, z, preferred_element_type=jnp.float32) * inv_n
        e2 = jnp.dot(ones_row, z * z, preferred_element_type=jnp.float32) * inv_n
        v = jnp.maximum(e2 - m * m, 0.0)
        sc = aux[1:2, :] * jax.lax.rsqrt(v + EPS)
        sh = aux[2:3, :] - m * sc
        return z * sc + sh

    # layer 1: [analysis | status]   (756 -> 168)
    u1 = lin_lrelu_bn(s_bf, w1_ref[...], aux1_ref[...])                    # (N, 168)
    # layer 2: blockdiag(interpretation, valuation)   (168 -> 126)
    u2 = lin_lrelu_bn(u1.astype(jnp.bfloat16), w2_ref[...], aux2_ref[...])  # (N, 126)

    # layer 3: blockdiag(planning, assessment)        (126 -> 43)
    aux3 = aux3_ref[...]
    z3 = jnp.dot(u2.astype(jnp.bfloat16), w3_ref[...],
                 preferred_element_type=jnp.float32) + aux3[0:1, :]        # (N, 43)
    p = _lrelu(z3[:, 0:NF])
    m3 = jnp.dot(ones_row, p, preferred_element_type=jnp.float32) * inv_n
    e3 = jnp.dot(ones_row, p * p, preferred_element_type=jnp.float32) * inv_n
    v3 = jnp.maximum(e3 - m3 * m3, 0.0)
    sc3 = aux3[1:2, 0:NF] * jax.lax.rsqrt(v3 + EPS)
    sh3 = aux3[2:3, 0:NF] - m3 * sc3
    p = p * sc3 + sh3                                                      # (N, 42)

    value = jnp.tanh(z3[:, NF:NF + 1])                                     # (N, 1)

    # action layer padded to 128 lanes; padded bias = -1e30 so the f32
    # log_softmax over the full 128-wide block is exact for the 7 real actions.
    logits = jnp.dot(p.astype(jnp.bfloat16), w4_ref[...],
                     preferred_element_type=jnp.float32) + b4_ref[...]     # (N, 128)
    mx = jnp.max(logits, axis=1, keepdims=True)
    zc = logits - mx
    lse = jnp.log(jnp.sum(jnp.exp(zc), axis=1, keepdims=True))
    logp = zc - lse

    # Single unmasked lane-dense store; lane 7 carries the value head.
    lane = jax.lax.broadcasted_iota(jnp.int32, (n, OUT_LANES), 1)
    out_ref[...] = jnp.where(lane == ACTION_SIZE,
                             jnp.broadcast_to(value, (n, OUT_LANES)), logp)


# ----------------------------- wrapper ---------------------------------------


def _pack_params(params):
    # conv as a dense (42, 756) operator, channel-major output columns, bf16
    wconv = jnp.einsum("kqp,kc->qcp", _SHIFT,
                       params["wc"]).reshape(NF, NCH).astype(jnp.bfloat16)
    # per-channel gamma/beta pre-broadcast to the 756 channel-major columns
    gbc = jnp.repeat(params["gbc"], NF, axis=1).astype(jnp.float32)         # (2, 756)

    # layer 1: [analysis | status]
    w1 = jnp.concatenate([params["wa"], params["ws"]],
                         axis=1).astype(jnp.bfloat16)                       # (756, 168)
    aux1 = jnp.concatenate(
        [jnp.concatenate([params["ba"], params["bs"]], axis=1),
         jnp.concatenate([params["gba"], params["gbs"]], axis=1)], axis=0)  # (3, 168)

    # layer 2: blockdiag(interpretation, valuation)
    w2 = jnp.zeros((2 * HID, HID + NF), jnp.float32)
    w2 = w2.at[:HID, :HID].set(params["wi"]).at[HID:, HID:].set(
        params["wv"]).astype(jnp.bfloat16)                                  # (168, 126)
    aux2 = jnp.concatenate(
        [jnp.concatenate([params["bi"], params["bv"]], axis=1),
         jnp.concatenate([params["gbi"], params["gbv"]], axis=1)], axis=0)  # (3, 126)

    # layer 3: blockdiag(planning, assessment)
    w3 = jnp.zeros((HID + NF, NF + 1), jnp.float32)
    w3 = w3.at[:HID, :NF].set(params["wp"]).at[HID:, NF:].set(
        params["wass"]).astype(jnp.bfloat16)                                # (126, 43)
    aux3 = jnp.concatenate(
        [jnp.concatenate([params["bp"], params["bass"]], axis=1),
         jnp.concatenate([params["gbp"],
                          jnp.array([[1.0], [0.0]], jnp.float32)], axis=1)],
        axis=0)                                                             # (3, 43)

    # action layer padded to a lane-dense 128-wide block
    w4 = jnp.zeros((NF, OUT_LANES), jnp.float32).at[:, :ACTION_SIZE].set(
        params["wact"]).astype(jnp.bfloat16)                                # (42, 128)
    b4 = jnp.full((1, OUT_LANES), NEG_FILL, jnp.float32).at[:, :ACTION_SIZE].set(
        params["bact"])                                                     # (1, 128)
    return (wconv, jnp.asarray(_POOL), jnp.asarray(_POOL_T), gbc,
            w1, aux1, w2, aux2, w3, aux3, w4, b4)


def _vmem_limit_bytes():
    # Generation-aware scoped-VMEM budget: ~48 MiB on v7x (64 MiB physical),
    # ~96 MiB on v5e/v6e (128 MiB physical).  Conservative fallback if the
    # hardware query is unavailable.
    try:
        phys = int(pltpu.get_tpu_info().vmem_capacity_bytes)
        return min(phys * 3 // 4, 100 * 1024 * 1024)
    except Exception:
        return 48 * 1024 * 1024


def connect4_forward(params, x):
    # The chained training-mode BatchNorms need full-batch statistics, so the
    # whole batch stays VMEM-resident (no batch grid).  Peak live activations
    # are ~7 KB/row -> batches of a few thousand fit on v7x, ~10k on v5e/v6e.
    # Callers should batch at least a few hundred rows per call so the MXU's
    # M dimension is filled (tiny batches are latency-bound regardless).
    n = x.shape[0]
    # Board cells are small integers in production -> exact in bf16.
    xflat = x.reshape(n, NF).astype(jnp.bfloat16)
    packed = _pack_params(params)

    out = pl.pallas_call(
        fused_forward_kernel,
        out_shape=jax.ShapeDtypeStruct((n, OUT_LANES), jnp.float32),
        in_specs=[pl.BlockSpec(memory_space=pltpu.MemorySpace.VMEM)]
        * (1 + len(packed)),
        out_specs=pl.BlockSpec(memory_space=pltpu.MemorySpace.VMEM),
        compiler_params=pltpu.CompilerParams(
            vmem_limit_bytes=_vmem_limit_bytes()),
    )(xflat, *packed)

    pi = out[:, :ACTION_SIZE]                       # cols 8..127 are padding junk
    v = out[:, ACTION_SIZE:ACTION_SIZE + 1]
    return pi, v


# ----------------------------- params ----------------------------------------


def init_params(key):
    keys = list(jax.random.split(key, 20))

    def nxt():
        return keys.pop()

    def lin_init(fan_in, fan_out):
        lim = 1.0 / np.sqrt(fan_in)
        w = jax.random.uniform(nxt(), (fan_in, fan_out), jnp.float32, -lim, lim)
        b = jax.random.uniform(nxt(), (1, fan_out), jnp.float32, -lim, lim)
        return w, b

    def bn_init(nf):
        # row 0 = gamma (ones), row 1 = beta (zeros) -- PyTorch default init.
        return jnp.concatenate(
            [jnp.ones((1, nf), jnp.float32), jnp.zeros((1, nf), jnp.float32)],
            axis=0)

    p = {}
    p["wc"], p["bc"] = lin_init(9, C_CONV)              # conv 1->18, 3x3 (k=kh*3+kw)
    p["gbc"] = bn_init(C_CONV)
    p["wa"], p["ba"] = lin_init(NCH, HID)               # analysis 756 -> 84
    p["gba"] = bn_init(HID)
    p["wi"], p["bi"] = lin_init(HID, HID)               # interpretation 84 -> 84
    p["gbi"] = bn_init(HID)
    p["wp"], p["bp"] = lin_init(HID, NF)                # planning 84 -> 42
    p["gbp"] = bn_init(NF)
    p["wact"], p["bact"] = lin_init(NF, ACTION_SIZE)    # action 42 -> 7
    p["ws"], p["bs"] = lin_init(NCH, HID)               # status 756 -> 84
    p["gbs"] = bn_init(HID)
    p["wv"], p["bv"] = lin_init(HID, NF)                # valuation 84 -> 42
    p["gbv"] = bn_init(NF)
    p["wass"], p["bass"] = lin_init(NF, 1)              # assessment 42 -> 1
    return p


# --------------------------- pure-JAX reference ------------------------------


def reference_forward(params, x):
    n = x.shape[0]
    xi = x.reshape(n, 1, BOARD_Y, BOARD_X).astype(jnp.float32)
    wc = jnp.transpose(params["wc"]).reshape(C_CONV, 1, 3, 3)
    y = jax.lax.conv_general_dilated(
        xi, wc, window_strides=(1, 1), padding=((1, 1), (1, 1)),
        dimension_numbers=("NCHW", "OIHW", "NCHW"))
    y = y + params["bc"].reshape(1, C_CONV, 1, 1)
    m = jnp.mean(y, axis=(0, 2, 3), keepdims=True)
    v = jnp.mean((y - m) ** 2, axis=(0, 2, 3), keepdims=True)
    y = (y - m) / jnp.sqrt(v + EPS)
    y = (y * params["gbc"][0].reshape(1, C_CONV, 1, 1)
         + params["gbc"][1].reshape(1, C_CONV, 1, 1))
    s = _lrelu(y.reshape(n, NCH))

    def lin(a, w, b):
        return a @ w + b

    def bn(a, gb):
        mm = jnp.mean(a, axis=0, keepdims=True)
        vv = jnp.mean((a - mm) ** 2, axis=0, keepdims=True)
        return (a - mm) / jnp.sqrt(vv + EPS) * gb[0:1] + gb[1:2]

    h = bn(_lrelu(lin(s, params["wa"], params["ba"])), params["gba"])
    h = bn(_lrelu(lin(h, params["wi"], params["bi"])), params["gbi"])
    h = bn(_lrelu(lin(h, params["wp"], params["bp"])), params["gbp"])
    pi = jax.nn.log_softmax(lin(h, params["wact"], params["bact"]), axis=1)
    g = bn(_lrelu(lin(s, params["ws"], params["bs"])), params["gbs"])
    g = bn(_lrelu(lin(g, params["wv"], params["bv"])), params["gbv"])
    v_out = jnp.tanh(lin(g, params["wass"], params["bass"]))
    return pi, v_out


if __name__ == "__main__":
    key = jax.random.PRNGKey(0)
    pkey, xkey = jax.random.split(key)
    params = init_params(pkey)
    batch = 16
    # Connect4 boards hold {-1, 0, +1}; these are exact in bf16.
    x = jax.random.randint(xkey, (batch, BOARD_Y, BOARD_X), -1, 2).astype(jnp.float32)

    fwd = jax.jit(connect4_forward)
    pi, v = fwd(params, x)
    jax.block_until_ready((pi, v))

    assert pi.shape == (batch, ACTION_SIZE)
    assert v.shape == (batch, 1)

    pi_ref, v_ref = reference_forward(params, x)
    # Tolerance covers bf16 operands (f32 accumulation) on all 5 chained
    # matmuls; reference is full f32.
    np.testing.assert_allclose(np.asarray(pi), np.asarray(pi_ref),
                               rtol=5e-2, atol=5e-2)
    np.testing.assert_allclose(np.asarray(v), np.asarray(v_ref),
                               rtol=5e-2, atol=5e-2)

    print("KERNEL_OK")
</pallas_src>

<mosaic_0001>
module attributes {stable_mosaic.version = 11 : i64} {
  func.func @fused_forward_kernel(%arg0: memref<16x42xbf16, #tpu.memory_space<vmem>>, %arg1: memref<42x756xbf16, #tpu.memory_space<vmem>>, %arg2: memref<756x18xf32, #tpu.memory_space<vmem>>, %arg3: memref<18x756xf32, #tpu.memory_space<vmem>>, %arg4: memref<2x756xf32, #tpu.memory_space<vmem>>, %arg5: memref<756x168xbf16, #tpu.memory_space<vmem>>, %arg6: memref<3x168xf32, #tpu.memory_space<vmem>>, %arg7: memref<168x126xbf16, #tpu.memory_space<vmem>>, %arg8: memref<3x126xf32, #tpu.memory_space<vmem>>, %arg9: memref<126x43xbf16, #tpu.memory_space<vmem>>, %arg10: memref<3x43xf32, #tpu.memory_space<vmem>>, %arg11: memref<42x128xbf16, #tpu.memory_space<vmem>>, %arg12: memref<1x128xf32, #tpu.memory_space<vmem>>, %arg13: memref<16x128xf32, #tpu.memory_space<vmem>>) attributes {dimension_semantics = [], scalar_prefetch = 0 : i64, scratch_operands = 0 : i64, tpu.core_type = #tpu.core_type<tc>} {
    %cst = arith.constant 1.000000e+00 : f32
    %0 = vector.broadcast %cst : f32 to vector<1x16xf32>
    %c0 = arith.constant 0 : index
    %c0_0 = arith.constant 0 : index
    %1 = vector.load %arg0[%c0, %c0_0] : memref<16x42xbf16, #tpu.memory_space<vmem>>, vector<16x42xbf16>
    %c0_1 = arith.constant 0 : index
    %c0_2 = arith.constant 0 : index
    %2 = vector.load %arg1[%c0_1, %c0_2] : memref<42x756xbf16, #tpu.memory_space<vmem>>, vector<42x756xbf16>
    %cst_3 = arith.constant dense<0.000000e+00> : vector<16x756xf32>
    %3 = tpu.matmul %1, %2, %cst_3 {dimension_numbers = #tpu.dot_dimension_numbers<[1], [0], [0], [1], [0, 0, 1, 1], [], []>} : vector<16x42xbf16>, vector<42x756xbf16>, vector<16x756xf32> -> vector<16x756xf32>
    %cst_4 = arith.constant dense<0.000000e+00> : vector<1x756xf32>
    %4 = tpu.matmul %0, %3, %cst_4 {dimension_numbers = #tpu.dot_dimension_numbers<[1], [0], [0], [1], [0, 0, 1, 1], [], []>} : vector<1x16xf32>, vector<16x756xf32>, vector<1x756xf32> -> vector<1x756xf32>
    %5 = arith.mulf %3, %3 : vector<16x756xf32>
    %cst_5 = arith.constant dense<0.000000e+00> : vector<1x756xf32>
    %6 = tpu.matmul %0, %5, %cst_5 {dimension_numbers = #tpu.dot_dimension_numbers<[1], [0], [0], [1], [0, 0, 1, 1], [], []>} : vector<1x16xf32>, vector<16x756xf32>, vector<1x756xf32> -> vector<1x756xf32>
    %7 = tpu.concatenate %4, %6 in 0 : vector<1x756xf32>, vector<1x756xf32> -> vector<2x756xf32>
    %c0_6 = arith.constant 0 : index
    %c0_7 = arith.constant 0 : index
    %8 = vector.load %arg2[%c0_6, %c0_7] : memref<756x18xf32, #tpu.memory_space<vmem>>, vector<756x18xf32>
    %cst_8 = arith.constant dense<0.000000e+00> : vector<2x18xf32>
    %9 = tpu.matmul %7, %8, %cst_8 {dimension_numbers = #tpu.dot_dimension_numbers<[1], [0], [0], [1], [0, 0, 1, 1], [], []>} : vector<2x756xf32>, vector<756x18xf32>, vector<2x18xf32> -> vector<2x18xf32>
    %c0_9 = arith.constant 0 : index
    %c0_10 = arith.constant 0 : index
    %10 = vector.load %arg3[%c0_9, %c0_10] : memref<18x756xf32, #tpu.memory_space<vmem>>, vector<18x756xf32>
    %cst_11 = arith.constant dense<0.000000e+00> : vector<2x756xf32>
    %11 = tpu.matmul %9, %10, %cst_11 {dimension_numbers = #tpu.dot_dimension_numbers<[1], [0], [0], [1], [0, 0, 1, 1], [], []>} : vector<2x18xf32>, vector<18x756xf32>, vector<2x756xf32> -> vector<2x756xf32>
    %cst_12 = arith.constant 6.250000e-02 : f32
    %12 = vector.broadcast %cst_12 : f32 to vector<2x756xf32>
    %13 = arith.mulf %11, %12 : vector<2x756xf32>
    %14 = vector.extract_strided_slice %13 {offsets = [0, 0], sizes = [1, 756], strides = [1, 1]} : vector<2x756xf32> to vector<1x756xf32>
    %15 = vector.extract_strided_slice %13 {offsets = [1, 0], sizes = [1, 756], strides = [1, 1]} : vector<2x756xf32> to vector<1x756xf32>
    %16 = arith.mulf %14, %14 : vector<1x756xf32>
    %17 = arith.subf %15, %16 : vector<1x756xf32>
    %cst_13 = arith.constant 0.000000e+00 : f32
    %18 = vector.broadcast %cst_13 : f32 to vector<1x756xf32>
    %19 = arith.maximumf %17, %18 : vector<1x756xf32>
    %c0_14 = arith.constant 0 : index
    %c0_15 = arith.constant 0 : index
    %20 = vector.load %arg4[%c0_14, %c0_15] : memref<2x756xf32, #tpu.memory_space<vmem>>, vector<2x756xf32>
    %21 = vector.extract_strided_slice %20 {offsets = [0, 0], sizes = [1, 756], strides = [1, 1]} : vector<2x756xf32> to vector<1x756xf32>
    %cst_16 = arith.constant 9.99999974E-6 : f32
    %22 = vector.broadcast %cst_16 : f32 to vector<1x756xf32>
    %23 = arith.addf %19, %22 : vector<1x756xf32>
    %24 = math.rsqrt %23 : vector<1x756xf32>
    %25 = arith.mulf %21, %24 : vector<1x756xf32>
    %26 = vector.extract_strided_slice %20 {offsets = [1, 0], sizes = [1, 756], strides = [1, 1]} : vector<2x756xf32> to vector<1x756xf32>
    %27 = arith.mulf %14, %25 : vector<1x756xf32>
    %28 = arith.subf %26, %27 : vector<1x756xf32>
    %29 = vector.broadcast %25 : vector<1x756xf32> to vector<16x756xf32>
    %30 = arith.mulf %3, %29 : vector<16x756xf32>
    %31 = vector.broadcast %28 : vector<1x756xf32> to vector<16x756xf32>
    %32 = arith.addf %30, %31 : vector<16x756xf32>
    %cst_17 = arith.constant 0.00999999977 : f32
    %33 = vector.broadcast %cst_17 : f32 to vector<16x756xf32>
    %34 = arith.mulf %33, %32 : vector<16x756xf32>
    %35 = arith.maximumf %32, %34 : vector<16x756xf32>
    %36 = arith.truncf %35 : vector<16x756xf32> to vector<16x756xbf16>
    %c0_18 = arith.constant 0 : index
    %c0_19 = arith.constant 0 : index
    %37 = vector.load %arg5[%c0_18, %c0_19] : memref<756x168xbf16, #tpu.memory_space<vmem>>, vector<756x168xbf16>
    %c0_20 = arith.constant 0 : index
    %c0_21 = arith.constant 0 : index
    %38 = vector.load %arg6[%c0_20, %c0_21] : memref<3x168xf32, #tpu.memory_space<vmem>>, vector<3x168xf32>
    %cst_22 = arith.constant dense<0.000000e+00> : vector<16x168xf32>
    %39 = tpu.matmul %36, %37, %cst_22 {dimension_numbers = #tpu.dot_dimension_numbers<[1], [0], [0], [1], [0, 0, 1, 1], [], []>} : vector<16x756xbf16>, vector<756x168xbf16>, vector<16x168xf32> -> vector<16x168xf32>
    %40 = vector.extract_strided_slice %38 {offsets = [0, 0], sizes = [1, 168], strides = [1, 1]} : vector<3x168xf32> to vector<1x168xf32>
    %41 = vector.broadcast %40 : vector<1x168xf32> to vector<16x168xf32>
    %42 = arith.addf %39, %41 : vector<16x168xf32>
    %cst_23 = arith.constant 0.00999999977 : f32
    %43 = vector.broadcast %cst_23 : f32 to vector<16x168xf32>
    %44 = arith.mulf %43, %42 : vector<16x168xf32>
    %45 = arith.maximumf %42, %44 : vector<16x168xf32>
    %cst_24 = arith.constant dense<0.000000e+00> : vector<1x168xf32>
    %46 = tpu.matmul %0, %45, %cst_24 {dimension_numbers = #tpu.dot_dimension_numbers<[1], [0], [0], [1], [0, 0, 1, 1], [], []>} : vector<1x16xf32>, vector<16x168xf32>, vector<1x168xf32> -> vector<1x168xf32>
    %cst_25 = arith.constant 6.250000e-02 : f32
    %47 = vector.broadcast %cst_25 : f32 to vector<1x168xf32>
    %48 = arith.mulf %46, %47 : vector<1x168xf32>
    %49 = arith.mulf %45, %45 : vector<16x168xf32>
    %cst_26 = arith.constant dense<0.000000e+00> : vector<1x168xf32>
    %50 = tpu.matmul %0, %49, %cst_26 {dimension_numbers = #tpu.dot_dimension_numbers<[1], [0], [0], [1], [0, 0, 1, 1], [], []>} : vector<1x16xf32>, vector<16x168xf32>, vector<1x168xf32> -> vector<1x168xf32>
    %cst_27 = arith.constant 6.250000e-02 : f32
    %51 = vector.broadcast %cst_27 : f32 to vector<1x168xf32>
    %52 = arith.mulf %50, %51 : vector<1x168xf32>
    %53 = arith.mulf %48, %48 : vector<1x168xf32>
    %54 = arith.subf %52, %53 : vector<1x168xf32>
    %cst_28 = arith.constant 0.000000e+00 : f32
    %55 = vector.broadcast %cst_28 : f32 to vector<1x168xf32>
    %56 = arith.maximumf %54, %55 : vector<1x168xf32>
    %57 = vector.extract_strided_slice %38 {offsets = [1, 0], sizes = [1, 168], strides = [1, 1]} : vector<3x168xf32> to vector<1x168xf32>
    %cst_29 = arith.constant 9.99999974E-6 : f32
    %58 = vector.broadcast %cst_29 : f32 to vector<1x168xf32>
    %59 = arith.addf %56, %58 : vector<1x168xf32>
    %60 = math.rsqrt %59 : vector<1x168xf32>
    %61 = arith.mulf %57, %60 : vector<1x168xf32>
    %62 = vector.extract_strided_slice %38 {offsets = [2, 0], sizes = [1, 168], strides = [1, 1]} : vector<3x168xf32> to vector<1x168xf32>
    %63 = arith.mulf %48, %61 : vector<1x168xf32>
    %64 = arith.subf %62, %63 : vector<1x168xf32>
    %65 = vector.broadcast %61 : vector<1x168xf32> to vector<16x168xf32>
    %66 = arith.mulf %45, %65 : vector<16x168xf32>
    %67 = vector.broadcast %64 : vector<1x168xf32> to vector<16x168xf32>
    %68 = arith.addf %66, %67 : vector<16x168xf32>
    %69 = arith.truncf %68 : vector<16x168xf32> to vector<16x168xbf16>
    %c0_30 = arith.constant 0 : index
    %c0_31 = arith.constant 0 : index
    %70 = vector.load %arg7[%c0_30, %c0_31] : memref<168x126xbf16, #tpu.memory_space<vmem>>, vector<168x126xbf16>
    %c0_32 = arith.constant 0 : index
    %c0_33 = arith.constant 0 : index
    %71 = vector.load %arg8[%c0_32, %c0_33] : memref<3x126xf32, #tpu.memory_space<vmem>>, vector<3x126xf32>
    %cst_34 = arith.constant dense<0.000000e+00> : vector<16x126xf32>
    %72 = tpu.matmul %69, %70, %cst_34 {dimension_numbers = #tpu.dot_dimension_numbers<[1], [0], [0], [1], [0, 0, 1, 1], [], []>} : vector<16x168xbf16>, vector<168x126xbf16>, vector<16x126xf32> -> vector<16x126xf32>
    %73 = vector.extract_strided_slice %71 {offsets = [0, 0], sizes = [1, 126], strides = [1, 1]} : vector<3x126xf32> to vector<1x126xf32>
    %74 = vector.broadcast %73 : vector<1x126xf32> to vector<16x126xf32>
    %75 = arith.addf %72, %74 : vector<16x126xf32>
    %cst_35 = arith.constant 0.00999999977 : f32
    %76 = vector.broadcast %cst_35 : f32 to vector<16x126xf32>
    %77 = arith.mulf %76, %75 : vector<16x126xf32>
    %78 = arith.maximumf %75, %77 : vector<16x126xf32>
    %cst_36 = arith.constant dense<0.000000e+00> : vector<1x126xf32>
    %79 = tpu.matmul %0, %78, %cst_36 {dimension_numbers = #tpu.dot_dimension_numbers<[1], [0], [0], [1], [0, 0, 1, 1], [], []>} : vector<1x16xf32>, vector<16x126xf32>, vector<1x126xf32> -> vector<1x126xf32>
    %cst_37 = arith.constant 6.250000e-02 : f32
    %80 = vector.broadcast %cst_37 : f32 to vector<1x126xf32>
    %81 = arith.mulf %79, %80 : vector<1x126xf32>
    %82 = arith.mulf %78, %78 : vector<16x126xf32>
    %cst_38 = arith.constant dense<0.000000e+00> : vector<1x126xf32>
    %83 = tpu.matmul %0, %82, %cst_38 {dimension_numbers = #tpu.dot_dimension_numbers<[1], [0], [0], [1], [0, 0, 1, 1], [], []>} : vector<1x16xf32>, vector<16x126xf32>, vector<1x126xf32> -> vector<1x126xf32>
    %cst_39 = arith.constant 6.250000e-02 : f32
    %84 = vector.broadcast %cst_39 : f32 to vector<1x126xf32>
    %85 = arith.mulf %83, %84 : vector<1x126xf32>
    %86 = arith.mulf %81, %81 : vector<1x126xf32>
    %87 = arith.subf %85, %86 : vector<1x126xf32>
    %cst_40 = arith.constant 0.000000e+00 : f32
    %88 = vector.broadcast %cst_40 : f32 to vector<1x126xf32>
    %89 = arith.maximumf %87, %88 : vector<1x126xf32>
    %90 = vector.extract_strided_slice %71 {offsets = [1, 0], sizes = [1, 126], strides = [1, 1]} : vector<3x126xf32> to vector<1x126xf32>
    %cst_41 = arith.constant 9.99999974E-6 : f32
    %91 = vector.broadcast %cst_41 : f32 to vector<1x126xf32>
    %92 = arith.addf %89, %91 : vector<1x126xf32>
    %93 = math.rsqrt %92 : vector<1x126xf32>
    %94 = arith.mulf %90, %93 : vector<1x126xf32>
    %95 = vector.extract_strided_slice %71 {offsets = [2, 0], sizes = [1, 126], strides = [1, 1]} : vector<3x126xf32> to vector<1x126xf32>
    %96 = arith.mulf %81, %94 : vector<1x126xf32>
    %97 = arith.subf %95, %96 : vector<1x126xf32>
    %98 = vector.broadcast %94 : vector<1x126xf32> to vector<16x126xf32>
    %99 = arith.mulf %78, %98 : vector<16x126xf32>
    %100 = vector.broadcast %97 : vector<1x126xf32> to vector<16x126xf32>
    %101 = arith.addf %99, %100 : vector<16x126xf32>
    %c0_42 = arith.constant 0 : index
    %c0_43 = arith.constant 0 : index
    %102 = vector.load %arg10[%c0_42, %c0_43] : memref<3x43xf32, #tpu.memory_space<vmem>>, vector<3x43xf32>
    %103 = arith.truncf %101 : vector<16x126xf32> to vector<16x126xbf16>
    %c0_44 = arith.constant 0 : index
    %c0_45 = arith.constant 0 : index
    %104 = vector.load %arg9[%c0_44, %c0_45] : memref<126x43xbf16, #tpu.memory_space<vmem>>, vector<126x43xbf16>
    %cst_46 = arith.constant dense<0.000000e+00> : vector<16x43xf32>
    %105 = tpu.matmul %103, %104, %cst_46 {dimension_numbers = #tpu.dot_dimension_numbers<[1], [0], [0], [1], [0, 0, 1, 1], [], []>} : vector<16x126xbf16>, vector<126x43xbf16>, vector<16x43xf32> -> vector<16x43xf32>
    %106 = vector.extract_strided_slice %102 {offsets = [0, 0], sizes = [1, 43], strides = [1, 1]} : vector<3x43xf32> to vector<1x43xf32>
    %107 = vector.broadcast %106 : vector<1x43xf32> to vector<16x43xf32>
    %108 = arith.addf %105, %107 : vector<16x43xf32>
    %109 = vector.extract_strided_slice %108 {offsets = [0, 0], sizes = [16, 42], strides = [1, 1]} : vector<16x43xf32> to vector<16x42xf32>
    %cst_47 = arith.constant 0.00999999977 : f32
    %110 = vector.broadcast %cst_47 : f32 to vector<16x42xf32>
    %111 = arith.mulf %110, %109 : vector<16x42xf32>
    %112 = arith.maximumf %109, %111 : vector<16x42xf32>
    %cst_48 = arith.constant dense<0.000000e+00> : vector<1x42xf32>
    %113 = tpu.matmul %0, %112, %cst_48 {dimension_numbers = #tpu.dot_dimension_numbers<[1], [0], [0], [1], [0, 0, 1, 1], [], []>} : vector<1x16xf32>, vector<16x42xf32>, vector<1x42xf32> -> vector<1x42xf32>
    %cst_49 = arith.constant 6.250000e-02 : f32
    %114 = vector.broadcast %cst_49 : f32 to vector<1x42xf32>
    %115 = arith.mulf %113, %114 : vector<1x42xf32>
    %116 = arith.mulf %112, %112 : vector<16x42xf32>
    %cst_50 = arith.constant dense<0.000000e+00> : vector<1x42xf32>
    %117 = tpu.matmul %0, %116, %cst_50 {dimension_numbers = #tpu.dot_dimension_numbers<[1], [0], [0], [1], [0, 0, 1, 1], [], []>} : vector<1x16xf32>, vector<16x42xf32>, vector<1x42xf32> -> vector<1x42xf32>
    %cst_51 = arith.constant 6.250000e-02 : f32
    %118 = vector.broadcast %cst_51 : f32 to vector<1x42xf32>
    %119 = arith.mulf %117, %118 : vector<1x42xf32>
    %120 = arith.mulf %115, %115 : vector<1x42xf32>
    %121 = arith.subf %119, %120 : vector<1x42xf32>
    %cst_52 = arith.constant 0.000000e+00 : f32
    %122 = vector.broadcast %cst_52 : f32 to vector<1x42xf32>
    %123 = arith.maximumf %121, %122 : vector<1x42xf32>
    %124 = vector.extract_strided_slice %102 {offsets = [1, 0], sizes = [1, 42], strides = [1, 1]} : vector<3x43xf32> to vector<1x42xf32>
    %cst_53 = arith.constant 9.99999974E-6 : f32
    %125 = vector.broadcast %cst_53 : f32 to vector<1x42xf32>
    %126 = arith.addf %123, %125 : vector<1x42xf32>
    %127 = math.rsqrt %126 : vector<1x42xf32>
    %128 = arith.mulf %124, %127 : vector<1x42xf32>
    %129 = vector.extract_strided_slice %102 {offsets = [2, 0], sizes = [1, 42], strides = [1, 1]} : vector<3x43xf32> to vector<1x42xf32>
    %130 = arith.mulf %115, %128 : vector<1x42xf32>
    %131 = arith.subf %129, %130 : vector<1x42xf32>
    %132 = vector.broadcast %128 : vector<1x42xf32> to vector<16x42xf32>
    %133 = arith.mulf %112, %132 : vector<16x42xf32>
    %134 = vector.broadcast %131 : vector<1x42xf32> to vector<16x42xf32>
    %135 = arith.addf %133, %134 : vector<16x42xf32>
    %136 = vector.extract_strided_slice %108 {offsets = [0, 42], sizes = [16, 1], strides = [1, 1]} : vector<16x43xf32> to vector<16x1xf32>
    %137 = math.tanh %136 : vector<16x1xf32>
    %138 = arith.truncf %135 : vector<16x42xf32> to vector<16x42xbf16>
    %c0_54 = arith.constant 0 : index
    %c0_55 = arith.constant 0 : index
    %139 = vector.load %arg11[%c0_54, %c0_55] : memref<42x128xbf16, #tpu.memory_space<vmem>>, vector<42x128xbf16>
    %cst_56 = arith.constant dense<0.000000e+00> : vector<16x128xf32>
    %140 = tpu.matmul %138, %139, %cst_56 {dimension_numbers = #tpu.dot_dimension_numbers<[1], [0], [0], [1], [0, 0, 1, 1], [], []>} : vector<16x42xbf16>, vector<42x128xbf16>, vector<16x128xf32> -> vector<16x128xf32>
    %c0_57 = arith.constant 0 : index
    %c0_58 = arith.constant 0 : index
    %141 = vector.load %arg12[%c0_57, %c0_58] : memref<1x128xf32, #tpu.memory_space<vmem>>, vector<1x128xf32>
    %142 = vector.broadcast %141 : vector<1x128xf32> to vector<16x128xf32>
    %143 = arith.addf %140, %142 : vector<16x128xf32>
    %cst_59 = arith.constant dense<0xFF800000> : vector<16xf32>
    %144 = vector.multi_reduction <maximumf>, %143, %cst_59 [1] : vector<16x128xf32> to vector<16xf32>
    %145 = vector.shape_cast %144 : vector<16xf32> to vector<16x1xf32>
    %146 = vector.broadcast %145 : vector<16x1xf32> to vector<16x128xf32>
    %147 = arith.subf %143, %146 : vector<16x128xf32>
    %148 = math.exp %147 : vector<16x128xf32>
    %cst_60 = arith.constant dense<0.000000e+00> : vector<16xf32>
    %149 = vector.multi_reduction <add>, %148, %cst_60 [1] : vector<16x128xf32> to vector<16xf32>
    %150 = vector.shape_cast %149 : vector<16xf32> to vector<16x1xf32>
    %151 = math.log %150 : vector<16x1xf32>
    %152 = vector.broadcast %151 : vector<16x1xf32> to vector<16x128xf32>
    %153 = arith.subf %147, %152 : vector<16x128xf32>
    %154 = tpu.iota {dimensions = array<i32: 1>} : vector<16x128xi32>
    %c7_i32 = arith.constant 7 : i32
    %155 = vector.broadcast %c7_i32 : i32 to vector<16x128xi32>
    %156 = arith.cmpi eq, %154, %155 : vector<16x128xi32>
    %157 = vector.shape_cast %137 : vector<16x1xf32> to vector<16x1xf32>
    %158 = vector.broadcast %157 : vector<16x1xf32> to vector<16x128xf32>
    %159 = arith.select %156, %158, %153 : vector<16x128xi1>, vector<16x128xf32>
    %c0_61 = arith.constant 0 : index
    %c0_62 = arith.constant 0 : index
    %160 = vector.load %arg13[%c0_61, %c0_62] : memref<16x128xf32, #tpu.memory_space<vmem>>, vector<16x128xf32>
    tpu.vector_store %arg13[%c0_61, %c0_62], %159 {strides = array<i32>} : memref<16x128xf32, #tpu.memory_space<vmem>>, vector<16x128xf32>,
    return
  }
}

</mosaic_0001>

<bundles_post_ra>
// kernel: connect4_forward.1
= control target key start
LH: loop header
LB: loop body
LE: loop exit
PB: predicated region body
PF: predicated region fallthrough
CT: control target
= control target key end

     0   :  { %vm158_vm0 = vcmask 1044480   ;;  %vm154_vm1 = vcmask 343040   ;;  %vm261_vm2 = vcmask 130048   ;;  %vm641_vm3 = vcmask 1043456   ;;  %s4917_s1 = inlined_call_operand.vmem [shape: bf16[42,756], index: 1, kind: input, shape index: {}]   ;;  %s4918_s0 = inlined_call_operand.vmem [shape: bf16[16,42], index: 0, kind: input, shape index: {}]   ;;  %s4919_s2 = inlined_call_operand.vmem [shape: f32[756,18], index: 2, kind: input, shape index: {}]   ;;  %s4920_s3 = inlined_call_operand.vmem [shape: f32[18,756], index: 3, kind: input, shape index: {}]   ;;  %s4921_s5 = inlined_call_operand.vmem [shape: bf16[756,168], index: 5, kind: input, shape index: {}]   ;;  %s4922_s4 = inlined_call_operand.vmem [shape: f32[2,756], index: 4, kind: input, shape index: {}]   ;;  %s4923_s6 = inlined_call_operand.vmem [shape: f32[3,168], index: 6, kind: input, shape index: {}]   ;;  %s4924_s7 = inlined_call_operand.vmem [shape: bf16[168,126], index: 7, kind: input, shape index: {}]   ;;  %s4925_s8 = inlined_call_operand.vmem [shape: f32[3,126], index: 8, kind: input, shape index: {}]   ;;  %s4926_s9 = inlined_call_operand.vmem [shape: bf16[126,43], index: 9, kind: input, shape index: {}]   ;;  %s4927_s10 = inlined_call_operand.vmem [shape: f32[3,43], index: 10, kind: input, shape index: {}]   ;;  %s4928_s12 = inlined_call_operand.vmem [shape: f32[1,128], index: 12, kind: input, shape index: {}]   ;;  %s4929_s11 = inlined_call_operand.vmem [shape: bf16[42,128], index: 11, kind: input, shape index: {}]   ;;  %s4930_s13 = inlined_call_operand.vmem [shape: f32[16,128], index: 13, kind: output, shape index: {}]  }
   0x1   :  { %v2612_v0 = vld [vmem:[%s4917_s1 + $0x60] sm:$0xf]  ;;  %v3157_v1 = vld [vmem:[%s4917_s1 + $0x74] sm:$0x10]  ;;  %v2620_v2 = vld [vmem:[%s4917_s1 + $0x68] sm:$0xf] }
   0x2   :  { %v2613_v3 = vor.u32 %v3157_v1, %v2612_v0  ;;  %v3158_v4 = vld [vmem:[%s4917_s1 + $0x7c] sm:$0x10]  ;;  %v3154_v5 = vld [vmem:[%s4917_s1 + $0x64] sm:$0xf]  ;;  %v2614_v6 = vld [vmem:[%s4917_s1 + $0x78] sm:$0x10] }
   0x3   :  { %v2621_v7 = vor.u32 %v3158_v4, %v2620_v2  ;;  %v2617_v8 = vor.u32 %v3154_v5, %v2614_v6  ;;  %v2588_v9 = vld [vmem:[%s4917_s1 + $0x30] sm:$0xf]  ;;  %v3151_v10 = vld [vmem:[%s4917_s1 + $0x44] sm:$0xf0]  ;;  %v2596_v11 = vld [vmem:[%s4917_s1 + $0x38] sm:$0xf] }
   0x4   :  { %v160_v12 = vsel %vm158_vm0, %v2613_v3, 0  ;;  %v3152_v13 = vld [vmem:[%s4917_s1 + $0x4c] sm:$0xf0]  ;;  %v3148_v14 = vld [vmem:[%s4917_s1 + $0x34] sm:$0xf]  ;;  %v2589_v17 = vor.u32 %v3151_v10, %v2588_v9  ;;  %v3141_v36 = vld [vmem:[%s4918_s0] sm:$0xff] }
   0x5   :  { %182 = vmatpush.bf16.msra.mxu0 %v160_v12  ;;  %v166_v15 = vsel %vm158_vm0, %v2621_v7, 0  ;;  %v163_v16 = vsel %vm158_vm0, %v2617_v8, 0  ;;  %v2590_v18 = vld [vmem:[%s4917_s1 + $0x48] sm:$0xf0]  ;;  %v2564_v19 = vld [vmem:[%s4917_s1] sm:$0xf]  ;;  %v2597_v20 = vor.u32 %v3152_v13, %v2596_v11 }
   0x6   :  { %210 = vmatpush.bf16.msra.mxu2 %v166_v15  ;;  %196 = vmatpush.bf16.msra.mxu1 %v163_v16  ;;  %v2593_v21 = vor.u32 %v3148_v14, %v2590_v18  ;;  %v3145_v22 = vld [vmem:[%s4917_s1 + $0x14] sm:$0xf0]  ;;  %v2572_v23 = vld [vmem:[%s4917_s1 + $0x8] sm:$0xf]  ;;  %v3146_v24 = vld [vmem:[%s4917_s1 + $0x1c] sm:$0xf0] }
   0x7   :  { %v3142_v25 = vld [vmem:[%s4917_s1 + $0x4] sm:$0xf]  ;;  %v2566_v26 = vld [vmem:[%s4917_s1 + $0x18] sm:$0xf0]  ;;  %v3155_v27 = vld [vmem:[%s4917_s1 + $0x6c] sm:$0xf]  ;;  %v2565_v31 = vor.u32 %v3145_v22, %v2564_v19  ;;  %v2573_v34 = vor.u32 %v3146_v24, %v2572_v23 }
   0x8   :  { %v2622_v28 = vld [vmem:[%s4917_s1 + $0x80] sm:$0x10]  ;;  %v3156_v29 = vld [vmem:[%s4917_s1 + $0x74] sm:$0xf]  ;;  %v2630_v30 = vld [vmem:[%s4917_s1 + $0x88] sm:$0x10]  ;;  %v2569_v35 = vor.u32 %v3142_v25, %v2566_v26 }
   0x9   :  { %183 = vmatpush.bf16.msra.mxu0 %v2589_v17  ;;  %v2625_v32 = vor.u32 %v3155_v27, %v2622_v28  ;;  %v2633_v33 = vor.u32 %v3156_v29, %v2630_v30  ;;  %v3149_v37 = vld [vmem:[%s4917_s1 + $0x3c] sm:$0xf]  ;;  %v2598_v38 = vld [vmem:[%s4917_s1 + $0x50] sm:$0xf0]  ;;  %v3150_v41 = vld [vmem:[%s4917_s1 + $0x44] sm:$0xf] }
   0xa   :  { %211 = vmatpush.bf16.msra.mxu2 %v2597_v20  ;;  %197 = vmatpush.bf16.msra.mxu1 %v2593_v21  ;;  %v2606_v42 = vld [vmem:[%s4917_s1 + $0x58] sm:$0xf0]  ;;  %v2628_v43 = vld [vmem:[%s4917_s1 + $0x70] sm:$0xf]  ;;  %v3159_v44 = vld [vmem:[%s4917_s1 + $0x84] sm:$0x10]  ;;  %v2601_v45 = vor.u32 %v3149_v37, %v2598_v38 }
   0xb   :  { %v169_v39 = vsel %vm158_vm0, %v2625_v32, 0  ;;  %v175_v40 = vsel %vm158_vm0, %v2633_v33, 0  ;;  %v2609_v46 = vor.u32 %v3150_v41, %v2606_v42  ;;  %v3143_v47 = vld [vmem:[%s4917_s1 + $0xc] sm:$0xf]  ;;  %v2574_v48 = vld [vmem:[%s4917_s1 + $0x20] sm:$0xf0]  ;;  %v2629_v51 = vor.u32 %v3159_v44, %v2628_v43 }
   0xc   :  { %v3144_v49 = vld [vmem:[%s4917_s1 + $0x14] sm:$0xf]  ;;  %v2582_v50 = vld [vmem:[%s4917_s1 + $0x28] sm:$0xf0]  ;;  %v2577_v52 = vor.u32 %v3143_v47, %v2574_v48  ;;  %v2604_v55 = vld [vmem:[%s4917_s1 + $0x40] sm:$0xf] }
   0xd   :  { %184 = vmatpush.bf16.msra.mxu0 %v2565_v31  ;;  %v2585_v53 = vor.u32 %v3144_v49, %v2582_v50  ;;  %v172_v54 = vsel %vm158_vm0, %v2629_v51, 0  ;;  %v3153_v56 = vld [vmem:[%s4917_s1 + $0x54] sm:$0xf0]  ;;  %v2580_v58 = vld [vmem:[%s4917_s1 + $0x10] sm:$0xf]  ;;  %v3312_v2 = vmov 1.0  }
   0xe   :  { %212 = vmatpush.bf16.msra.mxu2 %v2573_v34  ;;  %198 = vmatpush.bf16.msra.mxu1 %v2569_v35  ;;  %v2605_v57 = vor.u32 %v3153_v56, %v2604_v55  ;;  %v3147_v59 = vld [vmem:[%s4917_s1 + $0x24] sm:$0xf0]  ;;  %v573_v12 = vld [vmem:[%s4919_s2 + $0xf8] sm:$0xff]  ;;  %v572_v14 = vld [vmem:[%s4919_s2 + $0xf0] sm:$0xff]  ;;  %vm535_vm4 = vcmask 1040384   ;;  %vm637_vm5 = vcmask 949248  }
   0xf   :  { %v2581_v60 = vor.u32 %v3147_v59, %v2580_v58  ;;  %v571_v17 = vld [vmem:[%s4919_s2 + $0xe8] sm:$0xff]  ;;  %v570_v18 = vld [vmem:[%s4919_s2 + $0xe0] sm:$0xff]  ;;  %v569_v20 = vld [vmem:[%s4919_s2 + $0xd8] sm:$0xff]  ;;  %vm787_vm6 = vcmask 1041408   ;;  %vm783_vm7 = vcmask 146432   ;;  %vm1047_vm12 = vcmask 1045508  }
  0x10   :  { %2634 = vmatmul.msk.bf16.vlgmr.msra.gmra.mxu0 %vm154_vm1, %v3141_v36  ;;  %v568_v22 = vld [vmem:[%s4919_s2 + $0xd0] sm:$0xff]  ;;  %v605_v27 = vld [vmem:[%s4919_s2 + $0x1f8] sm:$0xff]  ;;  %v567_v28 = vld [vmem:[%s4919_s2 + $0xc8] sm:$0xff] }
  0x11   :  { %224 = vmatpush.bf16.msrb.mxu0 %v169_v39  ;;  %2636 = vmatmul.msk.bf16.vlgmr.msra.gmra.mxu2 %vm154_vm1, %v3141_v36  ;;  %v557_v30 = vld [vmem:[%s4919_s2 + $0x78] sm:$0xff]  ;;  %v604_v31 = vld [vmem:[%s4919_s2 + $0x1f0] sm:$0xff]  ;;  %v566_v32 = vld [vmem:[%s4919_s2 + $0xc0] sm:$0xff] }
  0x12   :  { %252 = vmatpush.bf16.msrb.mxu1 %v175_v40  ;;  %v556_v33 = vld [vmem:[%s4919_s2 + $0x70] sm:$0xff]  ;;  %v603_v34 = vld [vmem:[%s4919_s2 + $0x1e8] sm:$0xff]  ;;  %v565_v35 = vld [vmem:[%s4919_s2 + $0xb8] sm:$0xff] }
  0x13   :  { %2635 = vmatmul.msk.bf16.vlgmr.msra.gmra.mxu1 %vm154_vm1, %v3141_v36  ;;  %v602_v37 = vld [vmem:[%s4919_s2 + $0x1e0] sm:$0xff]  ;;  %v601_v39 = vld [vmem:[%s4919_s2 + $0x1d8] sm:$0xff]  ;;  %v552_v41 = vld [vmem:[%s4919_s2 + $0x50] sm:$0xff] }
  0x14   :  { %v554_v38 = vld [vmem:[%s4919_s2 + $0x60] sm:$0xff]  ;;  %v553_v40 = vld [vmem:[%s4919_s2 + $0x58] sm:$0xff]  ;;  %v551_v42 = vld [vmem:[%s4919_s2 + $0x48] sm:$0xff] }
  0x15   :  { %225 = vmatpush.bf16.msrb.mxu0 %v2601_v45  ;;  %v550_v43 = vld [vmem:[%s4919_s2 + $0x40] sm:$0xff]  ;;  %v549_v44 = vld [vmem:[%s4919_s2 + $0x38] sm:$0xff]  ;;  %v548_v45 = vld [vmem:[%s4919_s2 + $0x30] sm:$0xff] }
  0x16   :  { %253 = vmatpush.bf16.msrb.mxu1 %v2609_v46  ;;  %v547_v46 = vld [vmem:[%s4919_s2 + $0x28] sm:$0xff]  ;;  %v546_v47 = vld [vmem:[%s4919_s2 + $0x20] sm:$0xff]  ;;  %v545_v48 = vld [vmem:[%s4919_s2 + $0x18] sm:$0xff] }
  0x17   :  { %v544_v49 = vld [vmem:[%s4919_s2 + $0x10] sm:$0xff]  ;;  %v542_v55 = vld [vmem:[%s4919_s2] sm:$0xff]  ;;  %v621_v59 = vld [vmem:[%s4919_s2 + $0x278] sm:$0xff] }
  0x18   :  { %v564_v50 = vld [vmem:[%s4919_s2 + $0xb0] sm:$0xff]  ;;  %v562_v56 = vld [vmem:[%s4919_s2 + $0xa0] sm:$0xff] }
  0x19   :  { %226 = vmatpush.bf16.msrb.mxu0 %v2577_v52  ;;  %v600_v51 = vld [vmem:[%s4919_s2 + $0x1d0] sm:$0xff]  ;;  %v543_v52 = vld [vmem:[%s4919_s2 + $0x8] sm:$0xff]  ;;  %v598_v58 = vld [vmem:[%s4919_s2 + $0x1c0] sm:$0xff] }
  0x1a   :  { %254 = vmatpush.bf16.msrb.mxu1 %v2585_v53  ;;  %v563_v53 = vld [vmem:[%s4919_s2 + $0xa8] sm:$0xff] }
  0x1d   :  { %238 = vmatpush.bf16.msra.mxu0 %v172_v54  ;;  %v599_v54 = vld [vmem:[%s4919_s2 + $0x1c8] sm:$0xff] }
  0x20   :  { %2637 = vmatmul.msk.bf16.vlgmr.msrb.gmra.mxu0 %vm154_vm1, %v3141_v36 }
  0x21   :  { %239 = vmatpush.bf16.msra.mxu0 %v2605_v57  ;;  %v589_v57 = vld [vmem:[%s4919_s2 + $0x178] sm:$0xff] }
  0x23   :  { %2639 = vmatmul.msk.bf16.vlgmr.msrb.gmra.mxu1 %vm154_vm1, %v3141_v36 }
  0x25   :  { %240 = vmatpush.bf16.msra.mxu0 %v2581_v60  ;;  %v561_v60 = vld [vmem:[%s4919_s2 + $0x98] sm:$0xff] }
  0x30   :  { %2638 = vmatmul.msk.bf16.vlgmr.msra.gmra.mxu0 %vm154_vm1, %v3141_v36  ;;  %v555_v36 = vld [vmem:[%s4919_s2 + $0x68] sm:$0xff] }
  0x8d   :  { %v3507_v61 = vpop.f32.mrf.mxu0 }
  0x8e   :  { %v385_v7 = vmul.f32 %v3507_v61, %v3507_v61 }
  0x90   :  { %v3509_v62 = vpop.f32.mrf.mxu1 }
  0x91   :  { %v386_v15 = vmul.f32 %v3509_v62, %v3509_v62 }
  0x94   :  { %v3511_v63 = vpop.f32.mrf.mxu2 }
  0x95   :  { %v3513_v0 = vpop.f32.mrf.mxu0  ;;  %v387_v29 = vmul.f32 %v3511_v63, %v3511_v63 }
  0x96   :  { %279 = vmatpush.msrb.mxu2 %v3513_v0  ;;  %v391_v5 = vmul.f32 %v3513_v0, %v3513_v0 }
  0x98   :  { %v3516_v1 = vpop.f32.mrf.mxu1  ;;  %280 = vmatpush.msrb.mxu2 %v3507_v61 }
  0x99   :  { %299 = vmatpush.msra.mxu3 %v3516_v1  ;;  %2640 = vmatmul.msk.f32.vlgmr.msrb.gmra.mxu2 %vm261_vm2, %v3312_v2  ;;  %v392_v13 = vmul.f32 %v3516_v1, %v3516_v1 }
  0x9b   :  { %300 = vmatpush.msra.mxu3 %v3509_v62 }
  0x9c   :  { %2641 = vmatmul.msk.f32.vlgmr.msra.gmra.mxu3 %vm261_vm2, %v3312_v2  ;;  %v3525_v3 = vpop.f32.mrf.mxu2 }
  0x9d   :  { %319 = vmatpush.msra.mxu2 %v3525_v3  ;;  %v3528_v4 = vpop.f32.mrf.mxu0  ;;  %v393_v25 = vmul.f32 %v3525_v3, %v3525_v3 }
  0x9e   :  { %v388_v11 = vmul.f32 %v3528_v4, %v3528_v4 }
  0x9f   :  { %320 = vmatpush.msra.mxu2 %v3511_v63 }
  0xa0   :  { %v3532_v6 = vpop.f32.mrf.mxu1 }
  0xa1   :  { %411 = vmatpush.msrb.mxu2 %v391_v5  ;;  %v390_v21 = vmul.f32 %v3532_v6, %v3532_v6  ;;  %v588_v5 = vld [vmem:[%s4919_s2 + $0x170] sm:$0xff] }
  0xa2   :  { %2642 = vmatmul.msk.f32.vlgmr.msra.gmra.mxu2 %vm261_vm2, %v3312_v2 }
  0xa3   :  { %412 = vmatpush.msrb.mxu2 %v385_v7  ;;  %v597_v7 = vld [vmem:[%s4919_s2 + $0x1b8] sm:$0xff] }
  0xa5   :  { %v3539_v8 = vpop.f32.mrf.mxu0 }
  0xa6   :  { %v394_v9 = vmul.f32 %v3539_v8, %v3539_v8  ;;  %339 = vmatpush.msrb.mxu3 %v3539_v8 }
  0xa8   :  { %v3544_v10 = vpop.f32.mrf.mxu1  ;;  %340 = vmatpush.msrb.mxu3 %v3528_v4  ;;  %471 = vmatpush.msra.mxu1 %v394_v9  ;;  %v620_v9 = vld [vmem:[%s4919_s2 + $0x270] sm:$0xff] }
  0xa9   :  { %2643 = vmatmul.msk.f32.vlgmr.msrb.gmra.mxu3 %vm261_vm2, %v3312_v2  ;;  %v396_v19 = vmul.f32 %v3544_v10, %v3544_v10 }
  0xaa   :  { %2646 = vmatmul.msk.f32.vlgmr.msrb.gmra.mxu2 %vm261_vm2, %v3312_v2  ;;  %379 = vmatpush.msra.mxu3 %v3544_v10 }
  0xab   :  { %472 = vmatpush.msra.mxu1 %v388_v11  ;;  %v560_v11 = vld [vmem:[%s4919_s2 + $0x90] sm:$0xff] }
  0xac   :  { %2649 = vmatmul.msk.f32.vlgmr.msra.gmra.mxu1 %vm261_vm2, %v3312_v2  ;;  %380 = vmatpush.msra.mxu3 %v3532_v6 }
  0xad   :  { %665 = vmatpush.msrb.mxu1 %v573_v12  ;;  %v3567_v16 = vpop.f32.mrf.mxu0  ;;  %v587_v12 = vld [vmem:[%s4919_s2 + $0x168] sm:$0xff] }
  0xae   :  { %431 = vmatpush.msrb.mxu3 %v392_v13  ;;  %v389_v26 = vmul.f32 %v3567_v16, %v3567_v16  ;;  %v596_v13 = vld [vmem:[%s4919_s2 + $0x1b0] sm:$0xff] }
  0xaf   :  { %666 = vmatpush.msrb.mxu1 %v572_v14  ;;  %v619_v14 = vld [vmem:[%s4919_s2 + $0x268] sm:$0xff] }
  0xb0   :  { %432 = vmatpush.msrb.mxu3 %v386_v15  ;;  %v559_v15 = vld [vmem:[%s4919_s2 + $0x88] sm:$0xff] }
  0xb1   :  { %667 = vmatpush.msrb.mxu1 %v571_v17  ;;  %2645 = vmatmul.msk.f32.vlgmr.msra.gmra.mxu3 %vm261_vm2, %v3312_v2  ;;  %v586_v17 = vld [vmem:[%s4919_s2 + $0x160] sm:$0xff] }
  0xb2   :  { %511 = vmatpush.msra.mxu3 %v396_v19  ;;  %v618_v19 = vld [vmem:[%s4919_s2 + $0x260] sm:$0xff] }
  0xb3   :  { %668 = vmatpush.msrb.mxu1 %v570_v18  ;;  %v595_v18 = vld [vmem:[%s4919_s2 + $0x1a8] sm:$0xff] }
  0xb4   :  { %512 = vmatpush.msra.mxu3 %v390_v21  ;;  %v585_v21 = vld [vmem:[%s4919_s2 + $0x158] sm:$0xff] }
  0xb5   :  { %669 = vmatpush.msrb.mxu1 %v569_v20  ;;  %v3587_v23 = vpop.f32.mrf.mxu0  ;;  %v558_v20 = vld [vmem:[%s4919_s2 + $0x80] sm:$0xff] }
  0xb6   :  { %v395_v24 = vmul.f32 %v3587_v23, %v3587_v23  ;;  %359 = vmatpush.msrb.mxu0 %v3587_v23 }
  0xb7   :  { %670 = vmatpush.msrb.mxu1 %v568_v22  ;;  %v594_v22 = vld [vmem:[%s4919_s2 + $0x1a0] sm:$0xff] }
  0xb8   :  { %360 = vmatpush.msrb.mxu0 %v3567_v16  ;;  %491 = vmatpush.msra.mxu2 %v395_v24  ;;  %v617_v24 = vld [vmem:[%s4919_s2 + $0x258] sm:$0xff] }
  0xb9   :  { %2644 = vmatmul.msk.f32.vlgmr.msrb.gmra.mxu0 %vm261_vm2, %v3312_v2  ;;  %2647 = vmatmul.msk.f32.vlgmr.msrb.gmra.mxu3 %vm261_vm2, %v3312_v2 }
  0xba   :  { %451 = vmatpush.msra.mxu0 %v393_v25  ;;  %492 = vmatpush.msra.mxu2 %v389_v26  ;;  %v636_v25 = vld [vmem:[%s4919_s2 + $0x2f0] sm:$0xf] }
  0xbb   :  { %2650 = vmatmul.msk.f32.vlgmr.msra.gmra.mxu2 %vm261_vm2, %v3312_v2  ;;  %705 = vmatpush.msrb.mxu3 %v605_v27  ;;  %v584_v26 = vld [vmem:[%s4919_s2 + $0x150] sm:$0xff]  ;;  %v593_v27 = vld [vmem:[%s4919_s2 + $0x198] sm:$0xff] }
  0xbc   :  { %452 = vmatpush.msra.mxu0 %v387_v29  ;;  %671 = vmatpush.msrb.mxu1 %v567_v28  ;;  %v616_v28 = vld [vmem:[%s4919_s2 + $0x250] sm:$0xff]  ;;  %v635_v29 = vld [vmem:[%s4919_s2 + $0x2e8] sm:$0xff] }
  0xbd   :  { %706 = vmatpush.msrb.mxu3 %v604_v31  ;;  %685 = vmatpush.msrb.mxu2 %v589_v57  ;;  %v592_v31 = vld [vmem:[%s4919_s2 + $0x190] sm:$0xff]  ;;  %v627_v57 = vld [vmem:[%s4919_s2 + $0x2a8] sm:$0xff] }
  0xbe   :  { %645 = vmatpush.msrb.mxu0 %v557_v30  ;;  %672 = vmatpush.msrb.mxu1 %v566_v32  ;;  %v583_v30 = vld [vmem:[%s4919_s2 + $0x148] sm:$0xff] }
  0xbf   :  { %707 = vmatpush.msrb.mxu3 %v603_v34  ;;  %686 = vmatpush.msrb.mxu2 %v588_v5  ;;  %v615_v32 = vld [vmem:[%s4919_s2 + $0x248] sm:$0xff]  ;;  %v582_v34 = vld [vmem:[%s4919_s2 + $0x140] sm:$0xff] }
  0xc0   :  { %646 = vmatpush.msrb.mxu0 %v556_v33  ;;  %673 = vmatpush.msrb.mxu1 %v565_v35  ;;  %v634_v33 = vld [vmem:[%s4919_s2 + $0x2e0] sm:$0xff]  ;;  %v591_v35 = vld [vmem:[%s4919_s2 + $0x188] sm:$0xff] }
  0xc1   :  { %2648 = vmatmul.msk.f32.vlgmr.msra.gmra.mxu0 %vm261_vm2, %v3312_v2  ;;  %2651 = vmatmul.msk.f32.vlgmr.msra.gmra.mxu3 %vm261_vm2, %v3312_v2  ;;  %v574_v5 = vld [vmem:[%s4919_s2 + $0x100] sm:$0xff] }
  0xc2   :  { %647 = vmatpush.msrb.mxu0 %v555_v36  ;;  %708 = vmatpush.msrb.mxu3 %v602_v37  ;;  %v614_v36 = vld [vmem:[%s4919_s2 + $0x240] sm:$0xff]  ;;  %v633_v37 = vld [vmem:[%s4919_s2 + $0x2d8] sm:$0xff] }
  0xc3   :  { %674 = vmatpush.msrb.mxu1 %v564_v50  ;;  %687 = vmatpush.msrb.mxu2 %v587_v12  ;;  %v629_v50 = vld [vmem:[%s4919_s2 + $0x2b8] sm:$0xff]  ;;  %v624_v12 = vld [vmem:[%s4919_s2 + $0x290] sm:$0xff] }
  0xc4   :  { %648 = vmatpush.msrb.mxu0 %v554_v38  ;;  %709 = vmatpush.msrb.mxu3 %v601_v39  ;;  %v581_v38 = vld [vmem:[%s4919_s2 + $0x138] sm:$0xff]  ;;  %v590_v39 = vld [vmem:[%s4919_s2 + $0x180] sm:$0xff] }
  0xc5   :  { %675 = vmatpush.msrb.mxu1 %v563_v53  ;;  %688 = vmatpush.msrb.mxu2 %v586_v17  ;;  %v628_v53 = vld [vmem:[%s4919_s2 + $0x2b0] sm:$0xff] }
  0xc6   :  { %649 = vmatpush.msrb.mxu0 %v553_v40  ;;  %710 = vmatpush.msrb.mxu3 %v600_v51  ;;  %v613_v40 = vld [vmem:[%s4919_s2 + $0x238] sm:$0xff] }
  0xc7   :  { %676 = vmatpush.msrb.mxu1 %v562_v56  ;;  %689 = vmatpush.msrb.mxu2 %v585_v21  ;;  %v577_v51 = vld [vmem:[%s4919_s2 + $0x118] sm:$0xff]  ;;  %v608_v56 = vld [vmem:[%s4919_s2 + $0x210] sm:$0xff] }
  0xc8   :  { %650 = vmatpush.msrb.mxu0 %v552_v41  ;;  %711 = vmatpush.msrb.mxu3 %v599_v54  ;;  %v632_v41 = vld [vmem:[%s4919_s2 + $0x2d0] sm:$0xff] }
  0xc9   :  { %677 = vmatpush.msrb.mxu1 %v561_v60  ;;  %690 = vmatpush.msrb.mxu2 %v584_v26  ;;  %v626_v60 = vld [vmem:[%s4919_s2 + $0x2a0] sm:$0xff] }
  0xca   :  { %651 = vmatpush.msrb.mxu0 %v551_v42  ;;  %712 = vmatpush.msrb.mxu3 %v598_v58  ;;  %v580_v42 = vld [vmem:[%s4919_s2 + $0x130] sm:$0xff]  ;;  %v575_v58 = vld [vmem:[%s4919_s2 + $0x108] sm:$0xff] }
  0xcb   :  { %678 = vmatpush.msrb.mxu1 %v560_v11  ;;  %691 = vmatpush.msrb.mxu2 %v583_v30 }
  0xcc   :  { %652 = vmatpush.msrb.mxu0 %v550_v43  ;;  %713 = vmatpush.msrb.mxu3 %v597_v7  ;;  %v612_v43 = vld [vmem:[%s4919_s2 + $0x230] sm:$0xff]  ;;  %v606_v7 = vld [vmem:[%s4919_s2 + $0x200] sm:$0xff] }
  0xcd   :  { %679 = vmatpush.msrb.mxu1 %v559_v15  ;;  %692 = vmatpush.msrb.mxu2 %v582_v34  ;;  %v622_v15 = vld [vmem:[%s4919_s2 + $0x280] sm:$0xff] }
  0xce   :  { %653 = vmatpush.msrb.mxu0 %v549_v44  ;;  %714 = vmatpush.msrb.mxu3 %v596_v13  ;;  %v631_v44 = vld [vmem:[%s4919_s2 + $0x2c8] sm:$0xff] }
  0xcf   :  { %680 = vmatpush.msrb.mxu1 %v558_v20  ;;  %693 = vmatpush.msrb.mxu2 %v581_v38 }
  0xd0   :  { %654 = vmatpush.msrb.mxu0 %v548_v45  ;;  %715 = vmatpush.msrb.mxu3 %v595_v18  ;;  %v579_v45 = vld [vmem:[%s4919_s2 + $0x128] sm:$0xff] }
  0xd1   :  { %2652 = vmatpush.msk.msra.mxu1 %vm641_vm3, %v636_v25  ;;  %694 = vmatpush.msrb.mxu2 %v580_v42  ;;  %v772_v42 = vld [vmem:[%s4920_s3 + $0x38] sm:$0xff] }
  0xd2   :  { %655 = vmatpush.msrb.mxu0 %v547_v46  ;;  %716 = vmatpush.msrb.mxu3 %v594_v22  ;;  %v611_v46 = vld [vmem:[%s4919_s2 + $0x228] sm:$0xff] }
  0xd3   :  { %747 = vmatpush.msra.mxu1 %v635_v29  ;;  %695 = vmatpush.msrb.mxu2 %v579_v45  ;;  %v779_v45 = vld [vmem:[%s4920_s3 + $0x70] sm:$0x3] }
  0xd4   :  { %656 = vmatpush.msrb.mxu0 %v546_v47  ;;  %717 = vmatpush.msrb.mxu3 %v593_v27  ;;  %v630_v47 = vld [vmem:[%s4919_s2 + $0x2c0] sm:$0xff] }
  0xd5   :  { %748 = vmatpush.msra.mxu1 %v634_v33 }
  0xd6   :  { %657 = vmatpush.msrb.mxu0 %v545_v48  ;;  %718 = vmatpush.msrb.mxu3 %v592_v31  ;;  %v578_v48 = vld [vmem:[%s4919_s2 + $0x120] sm:$0xff] }
  0xd7   :  { %749 = vmatpush.msra.mxu1 %v633_v37  ;;  %696 = vmatpush.msrb.mxu2 %v578_v48  ;;  %v774_v48 = vld [vmem:[%s4920_s3 + $0x48] sm:$0xff] }
  0xd8   :  { %658 = vmatpush.msrb.mxu0 %v544_v49  ;;  %719 = vmatpush.msrb.mxu3 %v591_v35  ;;  %v610_v49 = vld [vmem:[%s4919_s2 + $0x220] sm:$0xff] }
  0xd9   :  { %750 = vmatpush.msra.mxu1 %v632_v41  ;;  %697 = vmatpush.msrb.mxu2 %v577_v51  ;;  %v771_v41 = vld [vmem:[%s4920_s3 + $0x30] sm:$0xff] }
  0xda   :  { %659 = vmatpush.msrb.mxu0 %v543_v52  ;;  %720 = vmatpush.msrb.mxu3 %v590_v39  ;;  %v609_v52 = vld [vmem:[%s4919_s2 + $0x218] sm:$0xff]  ;;  %v777_v39 = vld [vmem:[%s4920_s3 + $0x60] sm:$0x3] }
  0xdb   :  { %751 = vmatpush.msra.mxu1 %v631_v44  ;;  %v766_v44 = vld [vmem:[%s4920_s3 + $0x8] sm:$0xff] }
  0xdc   :  { %660 = vmatpush.msrb.mxu0 %v542_v55  ;;  %v576_v55 = vld [vmem:[%s4919_s2 + $0x110] sm:$0xff] }
  0xdd   :  { %752 = vmatpush.msra.mxu1 %v630_v47  ;;  %698 = vmatpush.msrb.mxu2 %v576_v55  ;;  %v773_v47 = vld [vmem:[%s4920_s3 + $0x40] sm:$0xff] }
  0xde   :  { %725 = vmatpush.msra.mxu0 %v621_v59  ;;  %v607_v59 = vld [vmem:[%s4919_s2 + $0x208] sm:$0xff] }
  0xdf   :  { %753 = vmatpush.msra.mxu1 %v629_v50  ;;  %699 = vmatpush.msrb.mxu2 %v575_v58  ;;  %v768_v50 = vld [vmem:[%s4920_s3 + $0x18] sm:$0xff] }
  0xe0   :  { %726 = vmatpush.msra.mxu0 %v620_v9  ;;  %v625_v9 = vld [vmem:[%s4919_s2 + $0x298] sm:$0xff] }
  0xe1   :  { %754 = vmatpush.msra.mxu1 %v628_v53  ;;  %700 = vmatpush.msrb.mxu2 %v574_v5 }
  0xe2   :  { %727 = vmatpush.msra.mxu0 %v619_v14  ;;  %v623_v14 = vld [vmem:[%s4919_s2 + $0x288] sm:$0xff] }
  0xe3   :  { %755 = vmatpush.msra.mxu1 %v627_v57  ;;  %2654 = vmatpush.msk.msra.mxu2 %vm787_vm6, %v777_v39  ;;  %v3221_v39 = vld [vmem:[%s4921_s5 + $0x1e4] sm:$0xf0] }
  0xe4   :  { %728 = vmatpush.msra.mxu0 %v618_v19 }
  0xe5   :  { %756 = vmatpush.msra.mxu1 %v626_v60  ;;  %820 = vmatpush.msra.mxu2 %v771_v41  ;;  %v2710_v41 = vld [vmem:[%s4921_s5 + $0x50] sm:$0xf] }
  0xe6   :  { %729 = vmatpush.msra.mxu0 %v617_v24 }
  0xe7   :  { %757 = vmatpush.msra.mxu1 %v625_v9  ;;  %v782_v9 = vld [vmem:[%s4920_s3 + $0x88] sm:$0x3] }
  0xe8   :  { %730 = vmatpush.msra.mxu0 %v616_v28 }
  0xe9   :  { %758 = vmatpush.msra.mxu1 %v624_v12  ;;  %v776_v12 = vld [vmem:[%s4920_s3 + $0x58] sm:$0xff] }
  0xea   :  { %731 = vmatpush.msra.mxu0 %v615_v32 }
  0xeb   :  { %759 = vmatpush.msra.mxu1 %v623_v14  ;;  %v770_v14 = vld [vmem:[%s4920_s3 + $0x28] sm:$0xff] }
  0xec   :  { %732 = vmatpush.msra.mxu0 %v614_v36 }
  0xed   :  { %760 = vmatpush.msra.mxu1 %v622_v15  ;;  %v2726_v15 = vld [vmem:[%s4921_s5 + $0x70] sm:$0xf] }
  0xee   :  { %733 = vmatpush.msra.mxu0 %v613_v40  ;;  %v778_v40 = vld [vmem:[%s4920_s3 + $0x68] sm:$0x3] }
  0xef   :  { %2656 = vmatpush.msk.msra.mxu3 %vm787_vm6, %v778_v40 }
  0xf0   :  { %734 = vmatpush.msra.mxu0 %v612_v43  ;;  %v765_v43 = vld [vmem:[%s4920_s3] sm:$0xff] }
  0xf1   :  { %840 = vmatpush.msra.mxu3 %v772_v42  ;;  %821 = vmatpush.msra.mxu2 %v765_v43  ;;  %v3171_v42 = vld [vmem:[%s4921_s5 + $0x54] sm:$0xf0]  ;;  %v2774_v43 = vld [vmem:[%s4921_s5 + $0xd0] sm:$0xf] }
  0xf2   :  { %735 = vmatpush.msra.mxu0 %v611_v46  ;;  %v780_v46 = vld [vmem:[%s4920_s3 + $0x78] sm:$0x3] }
  0xf3   :  { %841 = vmatpush.msra.mxu3 %v766_v44  ;;  %v2711_v44 = vor.u32 %v3171_v42, %v2710_v41 }
  0xf4   :  { %736 = vmatpush.msra.mxu0 %v610_v49  ;;  %v767_v49 = vld [vmem:[%s4920_s3 + $0x10] sm:$0xff] }
  0xf6   :  { %737 = vmatpush.msra.mxu0 %v609_v52 }
  0xf8   :  { %738 = vmatpush.msra.mxu0 %v608_v56 }
  0xfa   :  { %739 = vmatpush.msra.mxu0 %v607_v59 }
  0xfc   :  { %740 = vmatpush.msra.mxu0 %v606_v7  ;;  %v781_v7 = vld [vmem:[%s4920_s3 + $0x80] sm:$0x3] }
 0x11c   :  { %v282_v54 = vpop.f32.mrf.mxu2 }
 0x11f   :  { %v302_v11 = vpop.f32.mrf.mxu3 }
 0x125   :  { %v322_v13 = vpop.f32.mrf.mxu2 }
 0x129   :  { %v474_v17 = vpop.f32.mrf.mxu1 }
 0x12a   :  { %v526_v18 = vrot.slane %v474_v17, 7  ;;  %v3175_v17 = vld [vmem:[%s4921_s5 + $0x74] sm:$0xf0] }
 0x12c   :  { %v342_v19 = vpop.f32.mrf.mxu3 }
 0x12d   :  { %v414_v20 = vpop.f32.mrf.mxu2  ;;  %v539_v22 = vsel %vm535_vm4, %v342_v19, %v526_v18  ;;  %v2790_v18 = vld [vmem:[%s4921_s5 + $0xf0] sm:$0xf]  ;;  %v2727_v19 = vor.u32 %v3175_v17, %v2726_v15 }
 0x12e   :  { %v523_v21 = vrot.slane %v414_v20, 7  ;;  %721 = vmatmul.f32.vlgmr.msrb.gmra.mxu3 %v539_v22  ;;  %v3191_v20 = vld [vmem:[%s4921_s5 + $0xf4] sm:$0xf0] }
 0x12f   :  { %2660 = vmatpush.msk.msrb.mxu3 %vm787_vm6, %v780_v46  ;;  %v3207_v22 = vld [vmem:[%s4921_s5 + $0x174] sm:$0xf0]  ;;  %v2838_v46 = vld [vmem:[%s4921_s5 + $0x150] sm:$0xf] }
 0x130   :  { %v536_v24 = vsel %vm535_vm4, %v282_v54, %v523_v21  ;;  %v2854_v21 = vld [vmem:[%s4921_s5 + $0x170] sm:$0xf] }
 0x131   :  { %661 = vmatmul.f32.vlgmr.msrb.gmra.mxu0 %v536_v24  ;;  %880 = vmatpush.msrb.mxu3 %v774_v48  ;;  %v2791_v24 = vor.u32 %v3191_v20, %v2790_v18  ;;  %v2822_v20 = vld [vmem:[%s4921_s5 + $0x130] sm:$0xf] }
 0x133   :  { %881 = vmatpush.msrb.mxu3 %v768_v50  ;;  %v2902_v50 = vld [vmem:[%s4921_s5 + $0x1d0] sm:$0xf] }
 0x134   :  { %v382_v25 = vpop.f32.mrf.mxu3 }
 0x136   :  { %v362_v26 = vpop.f32.mrf.mxu0 }
 0x13c   :  { %v434_v27 = vpop.f32.mrf.mxu3 }
 0x13d   :  { %v524_v28 = vrot.slane %v434_v27, 7  ;;  %v3223_v27 = vld [vmem:[%s4921_s5 + $0x1f4] sm:$0xf0] }
 0x13e   :  { %v454_v29 = vpop.f32.mrf.mxu0  ;;  %v494_v30 = vpop.f32.mrf.mxu2 }
 0x13f   :  { %v525_v31 = vrot.slane %v454_v29, 7  ;;  %v527_v32 = vrot.slane %v494_v30, 7  ;;  %v537_v33 = vsel %vm535_vm4, %v302_v11, %v524_v28  ;;  %v775_v11 = vld [vmem:[%s4920_s3 + $0x50] sm:$0xff]  ;;  %v2718_v29 = vld [vmem:[%s4921_s5 + $0x60] sm:$0xf] }
 0x140   :  { %681 = vmatmul.f32.vlgmr.msrb.gmra.mxu1 %v537_v33  ;;  %v3173_v30 = vld [vmem:[%s4921_s5 + $0x64] sm:$0xf0] }
 0x141   :  { %v538_v34 = vsel %vm535_vm4, %v322_v13, %v525_v31  ;;  %v540_v35 = vsel %vm535_vm4, %v362_v26, %v527_v32  ;;  %v769_v13 = vld [vmem:[%s4920_s3 + $0x20] sm:$0xff]  ;;  %v2918_v26 = vld [vmem:[%s4921_s5 + $0x1f0] sm:$0xf]  ;;  %v2719_v32 = vor.u32 %v3173_v30, %v2718_v29  ;;  %v3189_v33 = vld [vmem:[%s4921_s5 + $0xe4] sm:$0xf0] }
 0x142   :  { %701 = vmatmul.f32.vlgmr.msrb.gmra.mxu2 %v538_v34  ;;  %741 = vmatmul.f32.vlgmr.msra.gmra.mxu0 %v540_v35  ;;  %v2919_v28 = vor.u32 %v3223_v27, %v2918_v26  ;;  %v2782_v31 = vld [vmem:[%s4921_s5 + $0xe0] sm:$0xf]  ;;  %v3205_v35 = vld [vmem:[%s4921_s5 + $0x164] sm:$0xf0]  ;;  %v2886_v27 = vld [vmem:[%s4921_s5 + $0x1b0] sm:$0xf] }
 0x143   :  { %2658 = vmatpush.msk.msrb.mxu2 %vm787_vm6, %v779_v45  ;;  %v2846_v34 = vld [vmem:[%s4921_s5 + $0x160] sm:$0xf]  ;;  %v3187_v45 = vld [vmem:[%s4921_s5 + $0xd4] sm:$0xf0] }
 0x144   :  { %v514_v36 = vpop.f32.mrf.mxu3  ;;  %1808 = vmatpush.bf16.msrb.mxu0 %v2919_v28  ;;  %v2775_v48 = vor.u32 %v3187_v45, %v2774_v43  ;;  %v3215_v28 = vld [vmem:[%s4921_s5 + $0x1b4] sm:$0xf0]  ;;  %v2878_v43 = vld [vmem:[%s4921_s5 + $0x1a0] sm:$0xf] }
 0x145   :  { %v528_v37 = vrot.slane %v514_v36, 7  ;;  %860 = vmatpush.msrb.mxu2 %v773_v47  ;;  %v2783_v36 = vor.u32 %v3189_v33, %v2782_v31  ;;  %v3203_v47 = vld [vmem:[%s4921_s5 + $0x154] sm:$0xf0]  ;;  %v2887_v29 = vor.u32 %v3215_v28, %v2886_v27  ;;  %v3165_v33 = vld [vmem:[%s4921_s5 + $0x24] sm:$0xf0] }
 0x146   :  { %v3193_v27 = vld [vmem:[%s4921_s5 + $0x104] sm:$0xf0] }
 0x147   :  { %v541_v38 = vsel %vm535_vm4, %v382_v25, %v528_v37  ;;  %861 = vmatpush.msrb.mxu2 %v767_v49  ;;  %v2855_v25 = vor.u32 %v3207_v22, %v2854_v21  ;;  %v2847_v37 = vor.u32 %v3205_v35, %v2846_v34  ;;  %v2839_v49 = vor.u32 %v3203_v47, %v2838_v46  ;;  %v3199_v21 = vld [vmem:[%s4921_s5 + $0x134] sm:$0xf0]  ;;  %v2750_v34 = vld [vmem:[%s4921_s5 + $0xa0] sm:$0xf] }
 0x148   :  { %2653 = vmatmul.msk.f32.vlgmr.msra.gmra.mxu1 %vm637_vm5, %v541_v38  ;;  %v2910_v38 = vld [vmem:[%s4921_s5 + $0x1e0] sm:$0xf]  ;;  %v2823_v26 = vor.u32 %v3199_v21, %v2822_v20  ;;  %v3177_v21 = vld [vmem:[%s4921_s5 + $0x84] sm:$0xf0] }
 0x149   :  { %1794 = vmatpush.bf16.msrb.mxu1 %v2855_v25  ;;  %v2911_v40 = vor.u32 %v3221_v39, %v2910_v38  ;;  %v3197_v38 = vld [vmem:[%s4921_s5 + $0x124] sm:$0xf0]  ;;  %v2734_v20 = vld [vmem:[%s4921_s5 + $0x80] sm:$0xf] }
 0x14b   :  { %1809 = vmatpush.bf16.msrb.mxu0 %v2911_v40 }
 0x14d   :  { %1795 = vmatpush.bf16.msrb.mxu1 %v2847_v37  ;;  %v2814_v37 = vld [vmem:[%s4921_s5 + $0x120] sm:$0xf] }
 0x14e   :  { %v2815_v42 = vor.u32 %v3197_v38, %v2814_v37  ;;  %v3239_v37 = vld [vmem:[%s4921_s5 + $0x274] sm:$0xf0]  ;;  %v4176_v38 = vld [vmem:[%s4921_s5 + $0x2f0] sm:$0x33] }
 0x151   :  { %1796 = vmatpush.bf16.msrb.mxu1 %v2839_v49  ;;  %v3163_v49 = vld [vmem:[%s4921_s5 + $0x14] sm:$0xf0] }
 0x1ae   :  { %v662_v51 = vpop.f32.mrf.mxu0 }
 0x1b1   :  { %v722_v56 = vpop.f32.mrf.mxu3 }
 0x1bd   :  { %v682_v52 = vpop.f32.mrf.mxu1 }
 0x1be   :  { %v683_v53 = vadd.f32 %v682_v52, %v662_v51  ;;  %v3219_v51 = vld [vmem:[%s4921_s5 + $0x1d4] sm:$0xf0] }
 0x1bf   :  { %v742_v58 = vpop.f32.mrf.mxu0  ;;  %v2903_v52 = vor.u32 %v3219_v51, %v2902_v50 }
 0x1c1   :  { %1810 = vmatpush.bf16.msrb.mxu0 %v2903_v52 }
 0x1c5   :  { %v702_v54 = vpop.f32.mrf.mxu2  ;;  %v762_v60 = vpop.f32.mrf.mxu1 }
 0x1c6   :  { %v703_v55 = vadd.f32 %v702_v54, %v683_v53  ;;  %v2702_v53 = vld [vmem:[%s4921_s5 + $0x40] sm:$0xf]  ;;  %v3169_v54 = vld [vmem:[%s4921_s5 + $0x44] sm:$0xf0] }
 0x1c8   :  { %v723_v57 = vadd.f32 %v722_v56, %v703_v55  ;;  %v2766_v55 = vld [vmem:[%s4921_s5 + $0xc0] sm:$0xf]  ;;  %v2703_v56 = vor.u32 %v3169_v54, %v2702_v53  ;;  %v2742_v53 = vld [vmem:[%s4921_s5 + $0x90] sm:$0xf]  ;;  %v3179_v54 = vld [vmem:[%s4921_s5 + $0x94] sm:$0xf0] }
 0x1ca   :  { %v743_v59 = vadd.f32 %v742_v58, %v723_v57  ;;  %v3185_v57 = vld [vmem:[%s4921_s5 + $0xc4] sm:$0xf0]  ;;  %v2830_v58 = vld [vmem:[%s4921_s5 + $0x140] sm:$0xf] }
 0x1cc   :  { %v763_v5 = vadd.f32 %v762_v60, %v743_v59  ;;  %v3201_v59 = vld [vmem:[%s4921_s5 + $0x144] sm:$0xf0]  ;;  %v2767_v60 = vor.u32 %v3185_v57, %v2766_v55 }
 0x1ce   :  { %2655 = vmatmul.msk.f32.vlgmr.msra.gmra.mxu2 %vm783_vm7, %v763_v5  ;;  %2657 = vmatmul.msk.f32.vlgmr.msra.gmra.mxu3 %vm783_vm7, %v763_v5 }
 0x1cf   :  { %2662 = vmatpush.msk.msra.mxu2 %vm787_vm6, %v781_v7  ;;  %2664 = vmatpush.msk.msra.mxu3 %vm787_vm6, %v782_v9  ;;  %v2894_v7 = vld [vmem:[%s4921_s5 + $0x1c0] sm:$0xf]  ;;  %v3217_v9 = vld [vmem:[%s4921_s5 + $0x1c4] sm:$0xf0] }
 0x1d1   :  { %900 = vmatpush.msra.mxu2 %v775_v11  ;;  %920 = vmatpush.msra.mxu3 %v776_v12  ;;  %v2895_v11 = vor.u32 %v3217_v9, %v2894_v7  ;;  %v2694_v12 = vld [vmem:[%s4921_s5 + $0x30] sm:$0xf]  ;;  %v3211_v9 = vld [vmem:[%s4921_s5 + $0x194] sm:$0xf0] }
 0x1d2   :  { %v2870_v7 = vld [vmem:[%s4921_s5 + $0x190] sm:$0xf] }
 0x1d3   :  { %901 = vmatpush.msra.mxu2 %v769_v13  ;;  %921 = vmatpush.msra.mxu3 %v770_v14  ;;  %v3167_v13 = vld [vmem:[%s4921_s5 + $0x34] sm:$0xf0]  ;;  %v2758_v14 = vld [vmem:[%s4921_s5 + $0xb0] sm:$0xf] }
 0x1d4   :  { %1811 = vmatpush.bf16.msrb.mxu0 %v2895_v11  ;;  %v2695_v18 = vor.u32 %v3167_v13, %v2694_v12 }
 0x1d6   :  { %2659 = vmatmul.msk.f32.vlgmr.msrb.gmra.mxu2 %vm783_vm7, %v763_v5  ;;  %2661 = vmatmul.msk.f32.vlgmr.msrb.gmra.mxu3 %vm783_vm7, %v763_v5 }
 0x1d7   :  { %1766 = vmatpush.bf16.msrb.mxu2 %v2727_v19  ;;  %1780 = vmatpush.bf16.msrb.mxu3 %v2791_v24  ;;  %v3183_v19 = vld [vmem:[%s4921_s5 + $0xb4] sm:$0xf0] }
 0x1d8   :  { %v2759_v25 = vor.u32 %v3183_v19, %v2758_v14  ;;  %1812 = vmatpush.bf16.msrb.mxu0 %v2887_v29  ;;  %v3161_v19 = vld [vmem:[%s4921_s5 + $0x4] sm:$0xf0] }
 0x1db   :  { %1767 = vmatpush.bf16.msrb.mxu2 %v2719_v32  ;;  %1781 = vmatpush.bf16.msrb.mxu3 %v2783_v36  ;;  %v2686_v32 = vld [vmem:[%s4921_s5 + $0x20] sm:$0xf]  ;;  %v3181_v36 = vld [vmem:[%s4921_s5 + $0xa4] sm:$0xf0] }
 0x1dc   :  { %v2687_v35 = vor.u32 %v3165_v33, %v2686_v32  ;;  %v2751_v41 = vor.u32 %v3181_v36, %v2750_v34  ;;  %v3209_v32 = vld [vmem:[%s4921_s5 + $0x184] sm:$0xf0]  ;;  %v2982_v36 = vld [vmem:[%s4921_s5 + $0x270] sm:$0xf] }
 0x1de   :  { %2663 = vmatmul.msk.f32.vlgmr.msra.gmra.mxu2 %vm783_vm7, %v763_v5  ;;  %2665 = vmatmul.msk.f32.vlgmr.msra.gmra.mxu3 %vm783_vm7, %v763_v5  ;;  %v2831_v5 = vor.u32 %v3201_v59, %v2830_v58  ;;  %v2806_v59 = vld [vmem:[%s4921_s5 + $0x110] sm:$0xf] }
 0x1df   :  { %1768 = vmatpush.bf16.msrb.mxu2 %v2711_v44  ;;  %1782 = vmatpush.bf16.msrb.mxu3 %v2775_v48  ;;  %v3213_v44 = vld [vmem:[%s4921_s5 + $0x1a4] sm:$0xf0]  ;;  %v2678_v48 = vld [vmem:[%s4921_s5 + $0x10] sm:$0xf] }
 0x1e0   :  { %1797 = vmatpush.bf16.msrb.mxu1 %v2831_v5  ;;  %v2879_v45 = vor.u32 %v3213_v44, %v2878_v43  ;;  %v2679_v52 = vor.u32 %v3163_v49, %v2678_v48  ;;  %v3195_v5 = vld [vmem:[%s4921_s5 + $0x114] sm:$0xf0]  ;;  %v1565_v43 = vunpack.c.l.b16 %v4176_v38  ;;  %v3174_v44 = vld [vmem:[%s4921_s5 + $0x74] sm:$0xf] }
 0x1e2   :  { %1813 = vmatpush.bf16.msrb.mxu0 %v2879_v45  ;;  %v2728_v45 = vld [vmem:[%s4921_s5 + $0x78] sm:$0xf0] }
 0x1e3   :  { %1769 = vmatpush.bf16.msrb.mxu2 %v2703_v56  ;;  %1783 = vmatpush.bf16.msrb.mxu3 %v2767_v60  ;;  %v2743_v60 = vor.u32 %v3179_v54, %v2742_v53  ;;  %v1661_v53 = vpack.c.b16 %v1565_v43, %v1565_v43 }
 0x1e4   :  { %1798 = vmatpush.bf16.msrb.mxu1 %v2823_v26  ;;  %v2798_v26 = vld [vmem:[%s4921_s5 + $0x100] sm:$0xf] }
 0x1e5   :  { %v2799_v34 = vor.u32 %v3193_v27, %v2798_v26 }
 0x1e7   :  { %1770 = vmatpush.bf16.msrb.mxu2 %v2695_v18  ;;  %1784 = vmatpush.bf16.msrb.mxu3 %v2759_v25  ;;  %v2871_v18 = vor.u32 %v3211_v9, %v2870_v7 }
 0x1e8   :  { %1799 = vmatpush.bf16.msrb.mxu1 %v2815_v42  ;;  %v2983_v42 = vor.u32 %v3239_v37, %v2982_v36 }
 0x1e9   :  { %1814 = vmatpush.bf16.msrb.mxu0 %v2871_v18 }
 0x1eb   :  { %1771 = vmatpush.bf16.msrb.mxu2 %v2687_v35  ;;  %1785 = vmatpush.bf16.msrb.mxu3 %v2751_v41 }
 0x1ef   :  { %1772 = vmatpush.bf16.msrb.mxu2 %v2679_v52  ;;  %1786 = vmatpush.bf16.msrb.mxu3 %v2743_v60 }
 0x251   :  { %v823_v15 = vpop.f32.mrf.mxu2  ;;  %v843_v17 = vpop.f32.mrf.mxu3 }
 0x252   :  { %v4064_v22 = vmul.f32 0.0625, %v823_v15  ;;  %v4066_v24 = vmul.f32 0.0625, %v843_v17  ;;  %v2670_v15 = vld [vmem:[%s4921_s5] sm:$0xf]  ;;  %v2807_v17 = vor.u32 %v3195_v5, %v2806_v59 }
 0x253   :  { %v2671_v29 = vor.u32 %v3161_v19, %v2670_v15  ;;  %v1761_v19 = vsel %vm787_vm6, %v1661_v53, 0  ;;  %v2776_v53 = vld [vmem:[%s4921_s5 + $0xd8] sm:$0xf0] }
 0x254   :  { %v932_v30 = vmul.f32 %v4064_v22, %v4064_v22  ;;  %v933_v31 = vmul.f32 %v4066_v24, %v4066_v24  ;;  %1800 = vmatpush.bf16.msrb.mxu1 %v2807_v17 }
 0x255   :  { %1773 = vmatpush.bf16.msrb.mxu2 %v2671_v29  ;;  %v2784_v29 = vld [vmem:[%s4921_s5 + $0xe8] sm:$0xf0] }
 0x256   :  { %v944_v39 = vrot.slane %v932_v30, 7  ;;  %v945_v40 = vrot.slane %v933_v31, 7  ;;  %v2735_v30 = vor.u32 %v3177_v21, %v2734_v20  ;;  %v2862_v31 = vld [vmem:[%s4921_s5 + $0x180] sm:$0xf]  ;;  %v3172_v20 = vld [vmem:[%s4921_s5 + $0x64] sm:$0xf] }
 0x257   :  { %v2863_v35 = vor.u32 %v3209_v32, %v2862_v31 }
 0x258   :  { %v956_v46 = vsub.f32 %v4064_v22, %v944_v39  ;;  %v957_v47 = vsub.f32 %v4066_v24, %v945_v40  ;;  %1787 = vmatpush.bf16.msrb.mxu3 %v2735_v30  ;;  %1801 = vmatpush.bf16.msrb.mxu1 %v2799_v34  ;;  %v2966_v34 = vld [vmem:[%s4921_s5 + $0x250] sm:$0xf] }
 0x259   :  { %v863_v50 = vpop.f32.mrf.mxu2  ;;  %v883_v51 = vpop.f32.mrf.mxu3  ;;  %1815 = vmatpush.bf16.msrb.mxu0 %v2863_v35  ;;  %1822 = vmatpush.bf16.msra.mxu2 %v2983_v42  ;;  %v3235_v35 = vld [vmem:[%s4921_s5 + $0x254] sm:$0xf0] }
 0x25a   :  { %v962_v55 = vmax.f32 %v956_v46, 0.0  ;;  %v963_v56 = vmax.f32 %v957_v47, 0.0  ;;  %v4116_v57 = vmul.f32 0.0625, %v863_v50  ;;  %v4118_v58 = vmul.f32 0.0625, %v883_v51  ;;  %v3190_v46 = vld [vmem:[%s4921_s5 + $0xf4] sm:$0xf] }
 0x25b   :  { %v2731_v50 = vor.u32 %v3174_v44, %v2728_v45  ;;  %v2792_v51 = vld [vmem:[%s4921_s5 + $0xf8] sm:$0xf0]  ;;  %v3251_v42 = vld [vmem:[%s4921_s5 + $0x2d4] sm:$0xf0] }
 0x25c   :  { %v4132_v11 = vadd.f32 1e-05, %v962_v55  ;;  %v4134_v12 = vadd.f32 1e-05, %v963_v56  ;;  %v934_v13 = vmul.f32 %v4116_v57, %v4116_v57  ;;  %v935_v14 = vmul.f32 %v4118_v58, %v4118_v58  ;;  %v2974_v55 = vld [vmem:[%s4921_s5 + $0x260] sm:$0xf]  ;;  %1836 = vmatpush.bf16.msra.mxu3 %v1761_v19 }
 0x25d   :  { %v2795_v54 = vor.u32 %v3190_v46, %v2792_v51  ;;  %v3237_v56 = vld [vmem:[%s4921_s5 + $0x264] sm:$0xf0]  ;;  %1850 = vmatpush.bf16.msra.mxu1 %v2731_v50  ;;  %v3170_v46 = vld [vmem:[%s4921_s5 + $0x54] sm:$0xf] }
 0x25e   :  { %3280 = vrsqrt.f32 %v4132_v11  ;;  %v946_v25 = vrot.slane %v934_v13, 7  ;;  %v947_v28 = vrot.slane %v935_v14, 7  ;;  %v2975_v9 = vor.u32 %v3237_v56, %v2974_v55  ;;  %v3038_v13 = vld [vmem:[%s4921_s5 + $0x2e0] sm:$0xf]  ;;  %v3253_v14 = vld [vmem:[%s4921_s5 + $0x2e4] sm:$0xf0] }
 0x25f   :  { %3282 = vrsqrt.f32 %v4134_v12  ;;  %1864 = vmatpush.bf16.msra.mxu0 %v2795_v54  ;;  %v3039_v32 = vor.u32 %v3253_v14, %v3038_v13  ;;  %vm992_vm9 = vweird.f32 %v4134_v12  ;;  %v3233_v19 = vld [vmem:[%s4921_s5 + $0x244] sm:$0xf0] }
 0x260   :  { %v958_v33 = vsub.f32 %v4116_v57, %v946_v25  ;;  %v959_v39 = vsub.f32 %v4118_v58, %v947_v28  ;;  %v2720_v25 = vld [vmem:[%s4921_s5 + $0x68] sm:$0xf0]  ;;  %v3188_v28 = vld [vmem:[%s4921_s5 + $0xe4] sm:$0xf]  ;;  %1823 = vmatpush.bf16.msra.mxu2 %v2975_v9  ;;  %v2958_v9 = vld [vmem:[%s4921_s5 + $0x240] sm:$0xf] }
 0x261   :  { %v903_v40 = vpop.f32.mrf.mxu2  ;;  %v923_v41 = vpop.f32.mrf.mxu3  ;;  %1837 = vmatpush.bf16.msra.mxu3 %v3039_v32  ;;  %v2768_v32 = vld [vmem:[%s4921_s5 + $0xc8] sm:$0xf0] }
 0x262   :  { %v964_v47 = vmax.f32 %v958_v33, 0.0  ;;  %v4189_v48 = vmul.f32 0.0625, %v903_v40  ;;  %v4191_v49 = vmul.f32 0.0625, %v923_v41  ;;  %v965_v52 = vmax.f32 %v959_v39, 0.0  ;;  %v3030_v41 = vld [vmem:[%s4921_s5 + $0x2d0] sm:$0xf] }
 0x263   :  { %v2723_v33 = vor.u32 %v3172_v20, %v2720_v25  ;;  %v2787_v39 = vor.u32 %v3188_v28, %v2784_v29  ;;  %v2967_v40 = vor.u32 %v3235_v35, %v2966_v34  ;;  %v3031_v45 = vor.u32 %v3251_v42, %v3030_v41  ;;  %v3022_v20 = vld [vmem:[%s4921_s5 + $0x2c0] sm:$0xf]  ;;  %v3168_v28 = vld [vmem:[%s4921_s5 + $0x44] sm:$0xf]  ;;  %v2950_v34 = vld [vmem:[%s4921_s5 + $0x230] sm:$0xf] }
 0x264   :  { %v4202_v59 = vpop.eup %3280  ;;  %v4204_v60 = vadd.f32 1e-05, %v964_v47  ;;  %v936_v5 = vmul.f32 %v4189_v48, %v4189_v48  ;;  %v937_v7 = vmul.f32 %v4191_v49, %v4191_v49  ;;  %v4220_v18 = vadd.f32 1e-05, %v965_v52  ;;  %v2712_v47 = vld [vmem:[%s4921_s5 + $0x58] sm:$0xf0] }
 0x265   :  { %v4216_v15 = vpop.eup %3282  ;;  %v977_v17 = vmul.f32 %v4202_v59, %v4132_v11  ;;  %1851 = vmatpush.bf16.msra.mxu1 %v2723_v33  ;;  %1865 = vmatpush.bf16.msra.mxu0 %v2787_v39  ;;  %v2715_v51 = vor.u32 %v3170_v46, %v2712_v47  ;;  %v3186_v52 = vld [vmem:[%s4921_s5 + $0xd4] sm:$0xf]  ;;  %v3231_v35 = vld [vmem:[%s4921_s5 + $0x234] sm:$0xf0]  ;;  %v2959_v41 = vor.u32 %v3233_v19, %v2958_v9  ;;  %v3006_v25 = vld [vmem:[%s4921_s5 + $0x2a0] sm:$0xf]  ;;  %vm983_vm4 = vweird.f32 %v4202_v59 }
 0x266   :  { %v987_v21 = vmul.f32 %v4216_v15, %v4134_v12  ;;  %3284 = vrsqrt.f32 %v4204_v60  ;;  %v948_v27 = vrot.slane %v936_v5, 7  ;;  %v949_v31 = vrot.slane %v937_v7, 7  ;;  %1824 = vmatpush.bf16.msra.mxu2 %v2967_v40  ;;  %1838 = vmatpush.bf16.msra.mxu3 %v3031_v45  ;;  %v2744_v9 = vld [vmem:[%s4921_s5 + $0x98] sm:$0xf0] }
 0x267   :  { %v978_v26 = vmul.f32 %v4202_v59, %v977_v17  ;;  %3286 = vrsqrt.f32 %v4220_v18  ;;  %vm993_vm8 = vweird.f32 %v4216_v15  ;;  %v2779_v7 = vor.u32 %v3186_v52, %v2776_v53 }
 0x268   :  { %v988_v30 = vmul.f32 %v4216_v15, %v987_v21  ;;  %v960_v37 = vsub.f32 %v4189_v48, %v948_v27  ;;  %v961_v44 = vsub.f32 %v4191_v49, %v949_v31  ;;  %vm4292_vm10 = vmor %vm992_vm9, %vm993_vm8  ;;  %v3249_v27 = vld [vmem:[%s4921_s5 + $0x2c4] sm:$0xf0]  ;;  %v3184_v31 = vld [vmem:[%s4921_s5 + $0xc4] sm:$0xf]  ;;  %vm1002_vm13 = vweird.f32 %v4204_v60 }
 0x269   :  { %v4247_v36 = vmul.f32 0.5, %v978_v26  ;;  %1852 = vmatpush.bf16.msra.mxu1 %v2715_v51  ;;  %1866 = vmatpush.bf16.msra.mxu0 %v2779_v7  ;;  %v3023_v42 = vor.u32 %v3249_v27, %v3022_v20  ;;  %v2771_v47 = vor.u32 %v3184_v31, %v2768_v32  ;;  %v2951_v52 = vor.u32 %v3231_v35, %v2950_v34  ;;  %v3180_v34 = vld [vmem:[%s4921_s5 + $0xa4] sm:$0xf]  ;;  %v2752_v35 = vld [vmem:[%s4921_s5 + $0xa8] sm:$0xf0] }
 0x26a   :  { %v989_v43 = vmul.f32 0.5, %v988_v30  ;;  %v966_v50 = vmax.f32 %v960_v37, 0.0  ;;  %v967_v5 = vmax.f32 %v961_v44, 0.0  ;;  %v2704_v30 = vld [vmem:[%s4921_s5 + $0x48] sm:$0xf0]  ;;  %1825 = vmatpush.bf16.msra.mxu2 %v2959_v41  ;;  %vm1012_vm7 = vweird.f32 %v4220_v18 }
 0x26b   :  { %v980_v55 = vsub.f32 1.5, %v4247_v36  ;;  %v3014_v37 = vld [vmem:[%s4921_s5 + $0x2b0] sm:$0xf]  ;;  %v3166_v44 = vld [vmem:[%s4921_s5 + $0x34] sm:$0xf]  ;;  %v2707_v46 = vor.u32 %v3168_v28, %v2704_v30  ;;  %1839 = vmatpush.bf16.msra.mxu3 %v3023_v42  ;;  %vm982_vm9 = vweird.f32 %v4132_v11 }
 0x26c   :  { %v4270_v54 = vpop.eup %3284  ;;  %v990_v56 = vsub.f32 1.5, %v989_v43  ;;  %v4281_v17 = vadd.f32 1e-05, %v966_v50  ;;  %v4298_v26 = vadd.f32 1e-05, %v967_v5 }
 0x26d   :  { %v4276_v13 = vpop.eup %3286  ;;  %v997_v14 = vmul.f32 %v4270_v54, %v4204_v60  ;;  %vm1003_vm11 = vweird.f32 %v4270_v54  ;;  %v3247_v43 = vld [vmem:[%s4921_s5 + $0x2b4] sm:$0xf0]  ;;  %v3182_v50 = vld [vmem:[%s4921_s5 + $0xb4] sm:$0xf]  ;;  %v2942_v5 = vld [vmem:[%s4921_s5 + $0x220] sm:$0xf]  ;;  %1853 = vmatpush.bf16.msra.mxu1 %v2707_v46  ;;  %1867 = vmatpush.bf16.msra.mxu0 %v2771_v47  ;;  %v981_v60 = vmul.f32 %v4202_v59, %v980_v55  ;;  %v2755_v46 = vor.u32 %v3180_v34, %v2752_v35 }
 0x26e   :  { %v991_v21 = vmul.f32 %v4216_v15, %v990_v56  ;;  %v1007_v12 = vmul.f32 %v4276_v13, %v4220_v18  ;;  %3288 = vrsqrt.f32 %v4281_v17  ;;  %vm1013_vm14 = vweird.f32 %v4276_v13  ;;  %v2760_v56 = vld [vmem:[%s4921_s5 + $0xb8] sm:$0xf0]  ;;  %vm4356_vm15 = vmor %vm1002_vm13, %vm1003_vm11  ;;  %v3245_v28 = vld [vmem:[%s4921_s5 + $0x2a4] sm:$0xf0]  ;;  %1826 = vmatpush.bf16.msra.mxu2 %v2951_v52 }
 0x26f   :  { %v998_v29 = vmul.f32 %v4270_v54, %v997_v14  ;;  %3290 = vrsqrt.f32 %v4298_v26  ;;  %v3015_v53 = vor.u32 %v3247_v43, %v3014_v37  ;;  %v2763_v20 = vor.u32 %v3182_v50, %v2760_v56  ;;  %v2688_v36 = vld [vmem:[%s4921_s5 + $0x28] sm:$0xf0]  ;;  %vm4388_vm8 = vmor %vm1012_vm7, %vm1013_vm14  ;;  %v2934_v41 = vld [vmem:[%s4921_s5 + $0x210] sm:$0xf] }
 0x270   :  { %v1008_v33 = vmul.f32 %v4276_v13, %v1007_v12  ;;  %v995_v39 = vsel %vm4292_vm10, %v4216_v15, %v991_v21  ;;  %v2696_v15 = vld [vmem:[%s4921_s5 + $0x38] sm:$0xf0]  ;;  %v3229_v21 = vld [vmem:[%s4921_s5 + $0x224] sm:$0xf0]  ;;  %v3227_v42 = vld [vmem:[%s4921_s5 + $0x214] sm:$0xf0]  ;;  %vm1032_vm13 = vweird.f32 %v4298_v26 }
 0x271   :  { %v999_v40 = vmul.f32 0.5, %v998_v29  ;;  %v1042_v7 = vrot.slane %v995_v39, 6  ;;  %v2699_v19 = vor.u32 %v3166_v44, %v2696_v15  ;;  %v3164_v29 = vld [vmem:[%s4921_s5 + $0x24] sm:$0xf]  ;;  %v2943_v32 = vor.u32 %v3229_v21, %v2942_v5  ;;  %1840 = vmatpush.bf16.msra.mxu3 %v3015_v53  ;;  %v2998_v11 = vld [vmem:[%s4921_s5 + $0x290] sm:$0xf]  ;;  %vm4417_vm10 = vmor %vm982_vm9, %vm983_vm4  ;;  %1868 = vmatpush.bf16.msra.mxu0 %v2763_v20 }
 0x272   :  { %v1009_v45 = vmul.f32 0.5, %v1008_v33  ;;  %v3007_v33 = vor.u32 %v3245_v28, %v3006_v25  ;;  %v3243_v47 = vld [vmem:[%s4921_s5 + $0x294] sm:$0xf0]  ;;  %v3162_v15 = vld [vmem:[%s4921_s5 + $0x14] sm:$0xf]  ;;  %v985_v50 = vsel %vm4417_vm10, %v4202_v59, %v981_v60  ;;  %v4455_v25 = vld [vmem:[%s4922_s4] sm:$0xff]  ;;  %vm1022_vm4 = vweird.f32 %v4281_v17 }
 0x273   :  { %v1000_v51 = vsub.f32 1.5, %v999_v40  ;;  %v2691_v40 = vor.u32 %v3164_v29, %v2688_v36  ;;  %1854 = vmatpush.bf16.msra.mxu1 %v2699_v19  ;;  %v2680_v52 = vld [vmem:[%s4921_s5 + $0x18] sm:$0xf0]  ;;  %v3178_v53 = vld [vmem:[%s4921_s5 + $0x94] sm:$0xf]  ;;  %v1046_v56 = vsel %vm787_vm6, %v985_v50, %v1042_v7  ;;  %1827 = vmatpush.bf16.msra.mxu2 %v2943_v32  ;;  %v2935_v19 = vor.u32 %v3227_v42, %v2934_v41 }
 0x274   :  { %v1010_v14 = vsub.f32 1.5, %v1009_v45  ;;  %v4366_v12 = vpop.eup %3288  ;;  %v2999_v20 = vor.u32 %v3243_v47, %v2998_v11  ;;  %v2926_v21 = vld [vmem:[%s4921_s5 + $0x200] sm:$0xf]  ;;  %v3225_v7 = vld [vmem:[%s4921_s5 + $0x204] sm:$0xf0]  ;;  %v2683_v28 = vor.u32 %v3162_v15, %v2680_v52  ;;  %v2747_v29 = vor.u32 %v3178_v53, %v2744_v9 }
 0x275   :  { %v1001_v27 = vmul.f32 %v4270_v54, %v1000_v51  ;;  %v4383_v30 = vpop.eup %3290  ;;  %v1017_v31 = vmul.f32 %v4366_v12, %v4281_v17  ;;  %1841 = vmatpush.bf16.msra.mxu3 %v3007_v33  ;;  %1869 = vmatpush.bf16.msra.mxu0 %v2755_v46  ;;  %v2990_v36 = vld [vmem:[%s4921_s5 + $0x280] sm:$0xf]  ;;  %v3160_v32 = vld [vmem:[%s4921_s5 + $0x4] sm:$0xf]  ;;  %v2672_v33 = vld [vmem:[%s4921_s5 + $0x8] sm:$0xf0]  ;;  %v2927_v34 = vor.u32 %v3225_v7, %v2926_v21  ;;  %vm1023_vm14 = vweird.f32 %v4366_v12 }
 0x276   :  { %v1011_v55 = vmul.f32 %v4276_v13, %v1010_v14  ;;  %v1027_v39 = vmul.f32 %v4383_v30, %v4298_v26  ;;  %vm1033_vm11 = vweird.f32 %v4383_v30  ;;  %v3176_v35 = vld [vmem:[%s4921_s5 + $0x84] sm:$0xf]  ;;  %v2675_v11 = vor.u32 %v3160_v32, %v2672_v33  ;;  %vm1024_vm7 = vmor %vm1022_vm4, %vm1023_vm14  ;;  %v4508_v9 = vld [vmem:[%s4921_s5 + $0x178] sm:$0xf0] }
 0x277   :  { %v1005_v37 = vsel %vm4356_vm15, %v4270_v54, %v1001_v27  ;;  %v1018_v45 = vmul.f32 %v4366_v12, %v1017_v31  ;;  %1855 = vmatpush.bf16.msra.mxu1 %v2691_v40  ;;  %1828 = vmatpush.bf16.msra.mxu2 %v2935_v19  ;;  %vm1034_vm15 = vmor %vm1032_vm13, %vm1033_vm11  ;;  %vm2369_vm11 = vcmask 1046528   ;;  %vm2365_vm4 = vcmask 1031168  }
 0x278   :  { %v1043_v43 = vrot.slane %v1005_v37, 4  ;;  %v1015_v44 = vsel %vm4388_vm8, %v4276_v13, %v1011_v55  ;;  %v1028_v13 = vmul.f32 %v4383_v30, %v1027_v39  ;;  %v3241_v55 = vld [vmem:[%s4921_s5 + $0x284] sm:$0xf0]  ;;  %v2736_v37 = vld [vmem:[%s4921_s5 + $0x88] sm:$0xf0] }
 0x279   :  { %v1044_v51 = vrot.slane %v1015_v44, 2  ;;  %v1019_v5 = vmul.f32 0.5, %v1018_v45  ;;  %1842 = vmatpush.bf16.msra.mxu3 %v2999_v20  ;;  %v2991_v41 = vor.u32 %v3241_v55, %v2990_v36  ;;  %1870 = vmatpush.bf16.msra.mxu0 %v2747_v29  ;;  %v2739_v54 = vor.u32 %v3176_v35, %v2736_v37  ;;  %v4524_v20 = vld [vmem:[%s4921_s5 + $0x274] sm:$0xf] }
 0x27a   :  { %v1029_v14 = vmul.f32 0.5, %v1028_v13 }
 0x27b   :  { %v1048_v59 = vsel %vm1047_vm12, %v1043_v43, %v1044_v51  ;;  %v1020_v27 = vsub.f32 1.5, %v1019_v5  ;;  %1856 = vmatpush.bf16.msra.mxu1 %v2683_v28  ;;  %1829 = vmatpush.bf16.msra.mxu2 %v2927_v34  ;;  %v4529_v28 = vld [vmem:[%s4921_s5 + $0x278] sm:$0xf0] }
 0x27c   :  { %v1049_v60 = vsel %vm641_vm3, %v1046_v56, %v1048_v59  ;;  %v1030_v31 = vsub.f32 1.5, %v1029_v14  ;;  %v4513_v59 = vld [vmem:[%s4921_s5 + $0x1f4] sm:$0xf]  ;;  %v2987_v37 = vor.u32 %v4524_v20, %v4529_v28  ;;  %v2968_v28 = vld [vmem:[%s4921_s5 + $0x258] sm:$0xf0] }
 0x27d   :  { %v2666_v18 = vrot.slane %v1049_v60, 9  ;;  %v1021_v42 = vmul.f32 %v4366_v12, %v1020_v27  ;;  %1843 = vmatpush.bf16.msra.mxu3 %v2991_v41  ;;  %1871 = vmatpush.bf16.msra.mxu0 %v2739_v54  ;;  %v3234_v20 = vld [vmem:[%s4921_s5 + $0x254] sm:$0xf] }
 0x27e   :  { %v1031_v40 = vmul.f32 %v4383_v30, %v1030_v31 }
 0x27f   :  { %v1057_v39 = vmul.f32 %v2666_v18, %v4455_v25  ;;  %v1025_v51 = vsel %vm1024_vm7, %v4366_v12, %v1021_v42  ;;  %1857 = vmatpush.bf16.msra.mxu1 %v2675_v11  ;;  %v1566_v12 = vunpack.c.h.b16 %v4176_v38  ;;  %v4519_v38 = vld [vmem:[%s4921_s5 + $0x1f8] sm:$0xf0] }
 0x280   :  { %v1035_v26 = vsel %vm1034_vm15, %v4383_v30, %v1031_v40  ;;  %v2923_v35 = vor.u32 %v4513_v59, %v4519_v38  ;;  %v2840_v38 = vld [vmem:[%s4921_s5 + $0x158] sm:$0xf0] }
 0x281   :  { %v1061_v43 = vperm.slane %v1057_v39, 0  ;;  %v1062_v44 = vperm.slane %v1057_v39, 2  ;;  %v1063_v45 = vperm.slane %v1057_v39, 4  ;;  %v1064_v46 = vperm.slane %v1057_v39, 6 }
 0x282   :  { %v1045_v13 = vrot.slane %v1035_v26, 6  ;;  %v4533_v36 = vpack.c.b16 %v1566_v12, %v1566_v12 }
 0x283   :  { %v1074_v47 = vmul.f32 %v1062_v44, %v4066_v24  ;;  %v1075_v15 = vmul.f32 %v1063_v45, %v4116_v57  ;;  %v1076_v50 = vmul.f32 %v1064_v46, %v4118_v58  ;;  %v1073_v52 = vmul.f32 %v1061_v43, %v4064_v22  ;;  %v969_v24 = vld [vmem:[%s4922_s4 + $0x8] sm:$0xf]  ;;  %v4500_v58 = vld [vmem:[%s4921_s5 + $0x174] sm:$0xf] }
 0x284   :  { %v1050_v57 = vsel %vm787_vm6, %v1025_v51, %v1045_v13  ;;  %v1102_v19 = vperm.slane %v1064_v46, 0  ;;  %v1099_v60 = vperm.slane %v1061_v43, 0  ;;  %v1100_v27 = vperm.slane %v1062_v44, 0 }
 0x285   :  { %v1085_v17 = vrot.slane %v1074_v47, 6  ;;  %v1086_v53 = vrot.slane %v1075_v15, 4  ;;  %v1087_v30 = vrot.slane %v1076_v50, 2  ;;  %v2667_v5 = vrot.slane %v1050_v57, 9 }
 0x286   :  { %v2859_v29 = vor.u32 %v4500_v58, %v4508_v9  ;;  %v1101_v32 = vperm.slane %v1063_v45, 0  ;;  %v1108_v33 = vmul.f32 %v1102_v19, %v3528_v4  ;;  %v1114_v34 = vmul.f32 %v1102_v19, %v3539_v8 }
 0x287   :  { %v1089_v56 = vsel %vm787_vm6, %v1073_v52, %v1085_v17  ;;  %v1090_v22 = vsel %vm1047_vm12, %v1086_v53, %v1087_v30  ;;  %v1058_v7 = vmul.f32 %v2667_v5, %v969_v24  ;;  %v1105_v40 = vmul.f32 %v1099_v60, %v3507_v61  ;;  %v4559_v30 = vld [vmem:[%s4921_s5 + $0x168] sm:$0xf0] }
 0x288   :  { %v1091_v14 = vsel %vm641_vm3, %v1089_v56, %v1090_v22  ;;  %v1111_v41 = vmul.f32 %v1099_v60, %v3513_v0  ;;  %v1112_v44 = vmul.f32 %v1100_v27, %v3516_v1  ;;  %v1107_v45 = vmul.f32 %v1101_v32, %v3511_v63  ;;  %v4554_v63 = vld [vmem:[%s4921_s5 + $0x164] sm:$0xf] }
 0x289   :  { %v1093_v21 = vrot.slane %v1091_v14, 7  ;;  %v1065_v18 = vperm.slane %v1058_v7, 0  ;;  %v1066_v31 = vperm.slane %v1058_v7, 2 }
 0x28b   :  { %v1097_v55 = vsub.f32 %v4455_v25, %v1093_v21  ;;  %v1078_v39 = vmul.f32 %v1066_v31, %v4191_v49  ;;  %v1106_v25 = vmul.f32 %v1100_v27, %v3509_v62  ;;  %v1077_v8 = vmul.f32 %v1065_v18, %v4189_v48 }
 0x28c   :  { %v1103_v0 = vperm.slane %v1065_v18, 0  ;;  %v1104_v15 = vperm.slane %v1066_v31, 0  ;;  %v1113_v62 = vmul.f32 %v1101_v32, %v3525_v3 }
 0x28d   :  { %v1119_v42 = vperm.slane %v1097_v55, 1  ;;  %v1120_v11 = vperm.slane %v1097_v55, 3  ;;  %v1121_v54 = vperm.slane %v1097_v55, 5  ;;  %v1122_v4 = vperm.slane %v1097_v55, 7 }
 0x28e   :  { %v1088_v43 = vrot.slane %v1078_v39, 6 }
 0x28f   :  { %v1131_v46 = vperm.slane %v1119_v42, 1  ;;  %v1132_v26 = vperm.slane %v1120_v11, 1  ;;  %v1133_v49 = vperm.slane %v1121_v54, 1  ;;  %v1134_v47 = vperm.slane %v1122_v4, 1 }
 0x290   :  { %v1092_v61 = vsel %vm787_vm6, %v1077_v8, %v1088_v43  ;;  %v3236_v43 = vld [vmem:[%s4921_s5 + $0x264] sm:$0xf] }
 0x291   :  { %v1094_v50 = vrot.slane %v1092_v61, 7  ;;  %v1137_v51 = vadd.f32 %v1131_v46, %v1105_v40  ;;  %v1143_v13 = vadd.f32 %v1131_v46, %v1111_v41  ;;  %v1138_v52 = vadd.f32 %v1132_v26, %v1106_v25 }
 0x292   :  { %v1144_v48 = vadd.f32 %v1132_v26, %v1112_v44  ;;  %v1139_v17 = vadd.f32 %v1133_v49, %v1107_v45  ;;  %v1145_v53 = vadd.f32 %v1133_v49, %v1113_v62  ;;  %v1140_v1 = vadd.f32 %v1134_v47, %v1108_v33  ;;  %v3220_v33 = vld [vmem:[%s4921_s5 + $0x1e4] sm:$0xf]  ;;  %v2976_v44 = vld [vmem:[%s4921_s5 + $0x268] sm:$0xf0] }
 0x293   :  { %v1098_v57 = vsub.f32 %v969_v24, %v1094_v50  ;;  %v1149_v3 = vmul.f32 0.01, %v1137_v51  ;;  %v1155_v12 = vmul.f32 0.01, %v1143_v13  ;;  %v1150_v56 = vmul.f32 0.01, %v1138_v52 }
 0x294   :  { %v1156_v22 = vmul.f32 0.01, %v1144_v48  ;;  %v1151_v5 = vmul.f32 0.01, %v1139_v17  ;;  %v1157_v14 = vmul.f32 0.01, %v1145_v53  ;;  %v1146_v19 = vadd.f32 %v1134_v47, %v1114_v34 }
 0x295   :  { %v1123_v21 = vperm.slane %v1098_v57, 1  ;;  %v1124_v7 = vperm.slane %v1098_v57, 3  ;;  %v1161_v60 = vmax.f32 %v1137_v51, %v1149_v3  ;;  %v1167_v27 = vmax.f32 %v1143_v13, %v1155_v12  ;;  %v2912_v34 = vld [vmem:[%s4921_s5 + $0x1e8] sm:$0xf0]  ;;  %v3200_v50 = vld [vmem:[%s4921_s5 + $0x144] sm:$0xf] }
 0x296   :  { %v1162_v55 = vmax.f32 %v1138_v52, %v1150_v56  ;;  %v1168_v18 = vmax.f32 %v1144_v48, %v1156_v22  ;;  %v1163_v31 = vmax.f32 %v1139_v17, %v1151_v5  ;;  %v1169_v32 = vmax.f32 %v1145_v53, %v1157_v14  ;;  %v2832_v51 = vld [vmem:[%s4921_s5 + $0x148] sm:$0xf0]  ;;  %v3216_v48 = vld [vmem:[%s4921_s5 + $0x1c4] sm:$0xf] }
 0x297   :  { %v4564_v24 = vpack.c.bf16 %v1167_v27, %v1161_v60  ;;  %v1152_v39 = vmul.f32 0.01, %v1140_v1  ;;  %v1158_v40 = vmul.f32 0.01, %v1146_v19  ;;  %v2851_v41 = vor.u32 %v4554_v63, %v4559_v30  ;;  %v2896_v57 = vld [vmem:[%s4921_s5 + $0x1c8] sm:$0xf0] }
 0x298   :  { %v1136_v25 = vperm.slane %v1124_v7, 1  ;;  %v4571_v42 = vpack.c.bf16 %v1168_v18, %v1162_v55  ;;  %v4573_v11 = vpack.c.bf16 %v1169_v32, %v1163_v31  ;;  %v1135_v54 = vperm.slane %v1123_v21, 1  ;;  %v3232_v3 = vld [vmem:[%s4921_s5 + $0x244] sm:$0xf]  ;;  %v2960_v12 = vld [vmem:[%s4921_s5 + $0x248] sm:$0xf0] }
 0x299   :  { %1774 = vmatmul.bf16.vlgmr.msrb.gmra.mxu2 %v4564_v24  ;;  %v1164_v4 = vmax.f32 %v1140_v1, %v1152_v39  ;;  %v1170_v8 = vmax.f32 %v1146_v19, %v1158_v40  ;;  %v1109_v45 = vmul.f32 %v1103_v0, %v3567_v16  ;;  %v1115_v46 = vmul.f32 %v1103_v0, %v3587_v23  ;;  %v3202_v16 = vld [vmem:[%s4921_s5 + $0x154] sm:$0xf]  ;;  %v3248_v14 = vld [vmem:[%s4921_s5 + $0x2c4] sm:$0xf]  ;;  %v3024_v19 = vld [vmem:[%s4921_s5 + $0x2c8] sm:$0xf0] }
 0x29a   :  { %v1110_v26 = vmul.f32 %v1104_v15, %v3532_v6  ;;  %v1116_v49 = vmul.f32 %v1104_v15, %v3544_v10  ;;  %1788 = vmatmul.bf16.vlgmr.msrb.gmra.mxu3 %v4571_v42  ;;  %1802 = vmatmul.bf16.vlgmr.msrb.gmra.mxu1 %v4573_v11  ;;  %v1764_v47 = vsel %vm787_vm6, %v4533_v36, 0  ;;  %v2915_v61 = vor.u32 %v3220_v33, %v2912_v34  ;;  %v3252_v6 = vld [vmem:[%s4921_s5 + $0x2e4] sm:$0xf]  ;;  %v3040_v10 = vld [vmem:[%s4921_s5 + $0x2e8] sm:$0xf0] }
 0x29b   :  { %v4590_v62 = vpack.c.bf16 %v1170_v8, %v1164_v4  ;;  %1878 = vmatpush.bf16.msrb.mxu2 %v2859_v29  ;;  %1892 = vmatpush.bf16.msrb.mxu3 %v2923_v35  ;;  %v1141_v23 = vadd.f32 %v1135_v54, %v1109_v45  ;;  %v1147_v36 = vadd.f32 %v1135_v54, %v1115_v46  ;;  %v3218_v29 = vld [vmem:[%s4921_s5 + $0x1d4] sm:$0xf]  ;;  %v2904_v35 = vld [vmem:[%s4921_s5 + $0x1d8] sm:$0xf0]  ;;  %v3196_v45 = vld [vmem:[%s4921_s5 + $0x124] sm:$0xf] }
 0x29c   :  { %v1142_v58 = vadd.f32 %v1136_v25, %v1110_v26  ;;  %v1148_v9 = vadd.f32 %v1136_v25, %v1116_v49  ;;  %1906 = vmatpush.bf16.msrb.mxu1 %v2987_v37  ;;  %v2979_v59 = vor.u32 %v3236_v43, %v2976_v44  ;;  %v3250_v37 = vld [vmem:[%s4921_s5 + $0x2d4] sm:$0xf]  ;;  %v3043_v0 = vor.u32 %v3252_v6, %v3040_v10  ;;  %v3032_v15 = vld [vmem:[%s4921_s5 + $0x2d8] sm:$0xf0]  ;;  %v2816_v46 = vld [vmem:[%s4921_s5 + $0x128] sm:$0xf0] }
 0x29d   :  { %1816 = vmatmul.bf16.vlgmr.msrb.gmra.mxu0 %v4590_v62  ;;  %v2843_v13 = vor.u32 %v3202_v16, %v2840_v38  ;;  %v2907_v52 = vor.u32 %v3218_v29, %v2904_v35  ;;  %v1153_v17 = vmul.f32 0.01, %v1141_v23  ;;  %v1159_v53 = vmul.f32 0.01, %v1147_v36  ;;  %v3198_v18 = vld [vmem:[%s4921_s5 + $0x134] sm:$0xf] }
 0x29e   :  { %1920 = vmatpush.bf16.msrb.mxu0 %v1764_v47  ;;  %v1154_v1 = vmul.f32 0.01, %v1142_v58  ;;  %v1160_v63 = vmul.f32 0.01, %v1148_v9  ;;  %v2971_v30 = vor.u32 %v3234_v20, %v2968_v28  ;;  %v3035_v56 = vor.u32 %v3250_v37, %v3032_v15  ;;  %v2824_v31 = vld [vmem:[%s4921_s5 + $0x138] sm:$0xf0] }
 0x29f   :  { %1879 = vmatpush.bf16.msrb.mxu2 %v2851_v41  ;;  %1893 = vmatpush.bf16.msrb.mxu3 %v2915_v61  ;;  %v2835_v22 = vor.u32 %v3200_v50, %v2832_v51  ;;  %v2899_v5 = vor.u32 %v3216_v48, %v2896_v57  ;;  %v1165_v21 = vmax.f32 %v1141_v23, %v1153_v17  ;;  %v3214_v32 = vld [vmem:[%s4921_s5 + $0x1b4] sm:$0xf]  ;;  %v2888_v33 = vld [vmem:[%s4921_s5 + $0x1b8] sm:$0xf0]  ;;  %v3212_v26 = vld [vmem:[%s4921_s5 + $0x1a4] sm:$0xf] }
 0x2a0   :  { %1907 = vmatpush.bf16.msrb.mxu1 %v2979_v59  ;;  %v1171_v7 = vmax.f32 %v1147_v36, %v1159_v53  ;;  %v2963_v60 = vor.u32 %v3232_v3, %v2960_v12  ;;  %v1166_v27 = vmax.f32 %v1142_v58, %v1154_v1  ;;  %v1172_v55 = vmax.f32 %v1148_v9, %v1160_v63  ;;  %v3230_v39 = vld [vmem:[%s4921_s5 + $0x234] sm:$0xf]  ;;  %v2952_v40 = vld [vmem:[%s4921_s5 + $0x238] sm:$0xf0]  ;;  %v2880_v49 = vld [vmem:[%s4921_s5 + $0x1a8] sm:$0xf0] }
 0x2a1   :  { %v3027_v41 = vor.u32 %v3248_v14, %v3024_v19  ;;  %v2827_v25 = vor.u32 %v3198_v18, %v2824_v31  ;;  %v3246_v54 = vld [vmem:[%s4921_s5 + $0x2b4] sm:$0xf]  ;;  %v3016_v4 = vld [vmem:[%s4921_s5 + $0x2b8] sm:$0xf0]  ;;  %v2891_v43 = vor.u32 %v3214_v32, %v2888_v33  ;;  %v2955_v44 = vor.u32 %v3230_v39, %v2952_v40  ;;  %v3228_v47 = vld [vmem:[%s4921_s5 + $0x224] sm:$0xf] }
 0x2a2   :  { %1921 = vmatpush.bf16.msrb.mxu0 %v3043_v0  ;;  %v4674_v34 = vpack.c.bf16 %v1171_v7, %v1165_v21  ;;  %v4682_v8 = vpack.c.bf16 %v1172_v55, %v1166_v27  ;;  %v2944_v61 = vld [vmem:[%s4921_s5 + $0x228] sm:$0xf0]  ;;  %v3019_v6 = vor.u32 %v3246_v54, %v3016_v4  ;;  %v2819_v10 = vor.u32 %v3196_v45, %v2816_v46  ;;  %v3244_v16 = vld [vmem:[%s4921_s5 + $0x2a4] sm:$0xf]  ;;  %v3194_v9 = vld [vmem:[%s4921_s5 + $0x114] sm:$0xf] }
 0x2a3   :  { %1880 = vmatpush.bf16.msrb.mxu2 %v2843_v13  ;;  %1894 = vmatpush.bf16.msrb.mxu3 %v2907_v52  ;;  %v3008_v23 = vld [vmem:[%s4921_s5 + $0x2a8] sm:$0xf0]  ;;  %v2883_v36 = vor.u32 %v3212_v26, %v2880_v49  ;;  %v2947_v58 = vor.u32 %v3228_v47, %v2944_v61  ;;  %v3210_v59 = vld [vmem:[%s4921_s5 + $0x194] sm:$0xf]  ;;  %v2872_v38 = vld [vmem:[%s4921_s5 + $0x198] sm:$0xf0] }
 0x2a4   :  { %1908 = vmatpush.bf16.msrb.mxu1 %v2971_v30  ;;  %v3226_v29 = vld [vmem:[%s4921_s5 + $0x214] sm:$0xf]  ;;  %v2936_v35 = vld [vmem:[%s4921_s5 + $0x218] sm:$0xf0]  ;;  %v3011_v20 = vor.u32 %v3244_v16, %v3008_v23  ;;  %v2875_v0 = vor.u32 %v3210_v59, %v2872_v38  ;;  %v3192_v50 = vld [vmem:[%s4921_s5 + $0x104] sm:$0xf] }
 0x2a5   :  { %v3000_v37 = vld [vmem:[%s4921_s5 + $0x298] sm:$0xf0]  ;;  %v2939_v15 = vor.u32 %v3226_v29, %v2936_v35  ;;  %v2800_v51 = vld [vmem:[%s4921_s5 + $0x108] sm:$0xf0]  ;;  %v3208_v13 = vld [vmem:[%s4921_s5 + $0x184] sm:$0xf] }
 0x2a6   :  { %1922 = vmatpush.bf16.msrb.mxu0 %v3035_v56  ;;  %v2864_v52 = vld [vmem:[%s4921_s5 + $0x188] sm:$0xf0]  ;;  %v3224_v48 = vld [vmem:[%s4921_s5 + $0x204] sm:$0xf]  ;;  %v2803_v1 = vor.u32 %v3192_v50, %v2800_v51 }
 0x2a7   :  { %1881 = vmatpush.bf16.msrb.mxu2 %v2835_v22  ;;  %1895 = vmatpush.bf16.msrb.mxu3 %v2899_v5  ;;  %v2928_v17 = vld [vmem:[%s4921_s5 + $0x208] sm:$0xf0]  ;;  %v3240_v63 = vld [vmem:[%s4921_s5 + $0x284] sm:$0xf]  ;;  %v2867_v57 = vor.u32 %v3208_v13, %v2864_v52 }
 0x2a8   :  { %1909 = vmatpush.bf16.msrb.mxu1 %v2963_v60  ;;  %v2992_v30 = vld [vmem:[%s4921_s5 + $0x288] sm:$0xf0]  ;;  %v2931_v3 = vor.u32 %v3224_v48, %v2928_v17  ;;  %v4769_v56 = vld [vmem:[%s4923_s6] sm:$0x77] }
 0x2a9   :  { %1830 = vmatmul.bf16.vlgmr.msra.gmra.mxu2 %v4674_v34  ;;  %v2995_v12 = vor.u32 %v3240_v63, %v2992_v30  ;;  %v1276_v5 = vperm.slane %v4769_v56, 0 }
 0x2aa   :  { %1923 = vmatpush.bf16.msrb.mxu0 %v3027_v41  ;;  %3044 = vmatmul.msk.bf16.vlgmr.msra.gmra.mxu3 %vm637_vm5, %v4682_v8 }
 0x2ab   :  { %1858 = vmatmul.bf16.vlgmr.msra.gmra.mxu1 %v4564_v24  ;;  %1882 = vmatpush.bf16.msrb.mxu2 %v2827_v25  ;;  %v2808_v24 = vld [vmem:[%s4921_s5 + $0x118] sm:$0xf0]  ;;  %v1280_v21 = vperm.slane %v1276_v5, 0 }
 0x2ac   :  { %1896 = vmatpush.bf16.msrb.mxu3 %v2891_v43  ;;  %1910 = vmatpush.bf16.msrb.mxu1 %v2955_v44  ;;  %v2811_v28 = vor.u32 %v3194_v9, %v2808_v24 }
 0x2ad   :  { %1872 = vmatmul.bf16.vlgmr.msra.gmra.mxu0 %v4571_v42  ;;  %v3242_v42 = vld [vmem:[%s4921_s5 + $0x294] sm:$0xf] }
 0x2ae   :  { %1924 = vmatpush.bf16.msrb.mxu0 %v3019_v6  ;;  %v3003_v53 = vor.u32 %v3242_v42, %v3000_v37 }
 0x2af   :  { %1883 = vmatpush.bf16.msrb.mxu2 %v2819_v10 }
 0x2b0   :  { %1897 = vmatpush.bf16.msrb.mxu3 %v2883_v36  ;;  %1911 = vmatpush.bf16.msrb.mxu1 %v2947_v58 }
 0x2b2   :  { %1925 = vmatpush.bf16.msrb.mxu0 %v3011_v20 }
 0x2b3   :  { %1884 = vmatpush.bf16.msrb.mxu2 %v2811_v28 }
 0x2b4   :  { %1898 = vmatpush.bf16.msrb.mxu3 %v2875_v0  ;;  %1912 = vmatpush.bf16.msrb.mxu1 %v2939_v15 }
 0x2b6   :  { %1926 = vmatpush.bf16.msrb.mxu0 %v3003_v53 }
 0x2b7   :  { %1885 = vmatpush.bf16.msrb.mxu2 %v2803_v1 }
 0x2b8   :  { %1899 = vmatpush.bf16.msrb.mxu3 %v2867_v57  ;;  %1913 = vmatpush.bf16.msrb.mxu1 %v2931_v3 }
 0x2ba   :  { %1927 = vmatpush.bf16.msrb.mxu0 %v2995_v12  ;;  %1886 = vmatmul.bf16.vlgmr.msrb.gmra.mxu2 %v4573_v11 }
 0x2bb   :  { %1900 = vmatmul.bf16.vlgmr.msrb.gmra.mxu3 %v4590_v62  ;;  %1914 = vmatmul.bf16.vlgmr.msrb.gmra.mxu1 %v4674_v34 }
 0x2bd   :  { %3045 = vmatmul.msk.bf16.vlgmr.msrb.gmra.mxu0 %vm637_vm5, %v4682_v8  ;;  %v1277_v8 = vperm.slane %v4769_v56, 4 }
 0x2bf   :  { %v1281_v45 = vperm.slane %v1277_v8, 0 }
 0x317   :  { %v1803_v22 = vpop.f32.mrf.mxu1 }
 0x31a   :  { %v1817_v14 = vpop.f32.mrf.mxu0 }
 0x31c   :  { %v1775_v19 = vpop.f32.mrf.mxu2 }
 0x31d   :  { %v1789_v7 = vpop.f32.mrf.mxu3  ;;  %v1776_v11 = vadd.f32 %v1775_v19, %v1280_v21 }
 0x31f   :  { %v1805_v60 = vpop.f32.mrf.mxu1  ;;  %v1790_v55 = vadd.f32 %v1789_v7, %v1776_v11 }
 0x321   :  { %v1804_v32 = vadd.f32 %v1803_v22, %v1790_v55 }
 0x322   :  { %v1819_v62 = vpop.f32.mrf.mxu0 }
 0x323   :  { %v1818_v34 = vadd.f32 %v1817_v14, %v1804_v32 }
 0x324   :  { %v1777_v27 = vpop.f32.mrf.mxu2 }
 0x325   :  { %v1791_v18 = vpop.f32.mrf.mxu3  ;;  %v1778_v31 = vadd.f32 %v1777_v27, %v1280_v21  ;;  %v3261_v27 = vld [vmem:[%s4924_s7 + $0x38] sm:$0xff] }
 0x327   :  { %v1792_v33 = vadd.f32 %v1791_v18, %v1778_v31  ;;  %v3260_v18 = vld [vmem:[%s4924_s7 + $0x30] sm:$0xff] }
 0x328   :  { %v1859_v39 = vpop.f32.mrf.mxu1 }
 0x329   :  { %v1806_v54 = vadd.f32 %v1805_v60, %v1792_v33  ;;  %v1860_v16 = vadd.f32 %v1859_v39, %v1281_v45  ;;  %v3259_v33 = vld [vmem:[%s4924_s7 + $0x28] sm:$0xff] }
 0x32a   :  { %v1873_v41 = vpop.f32.mrf.mxu0 }
 0x32b   :  { %v1820_v44 = vadd.f32 %v1819_v62, %v1806_v54  ;;  %v1874_v9 = vadd.f32 %v1873_v41, %v1860_v16  ;;  %v2118_v41 = vld [vmem:[%s4924_s7 + $0x50] sm:$0xf]  ;;  %v3258_v54 = vld [vmem:[%s4924_s7 + $0x20] sm:$0xff]  ;;  %v3255_v16 = vld [vmem:[%s4924_s7 + $0x8] sm:$0xff] }
 0x32c   :  { %v1831_v40 = vpop.f32.mrf.mxu2 }
 0x32d   :  { %v1845_v25 = vpop.f32.mrf.mxu3  ;;  %v1832_v4 = vadd.f32 %v1831_v40, %v1818_v34  ;;  %v2162_v34 = vunpack.c.l.b16 %v2118_v41 }
 0x32f   :  { %v1846_v43 = vadd.f32 %v1845_v25, %v1832_v4  ;;  %v2173_v4 = vpack.c.b16 %v2162_v34, %v2162_v34 }
 0x330   :  { %v1861_v26 = vpop.f32.mrf.mxu1 }
 0x331   :  { %v1934_v61 = vmul.f32 0.01, %v1846_v43  ;;  %v1862_v28 = vadd.f32 %v1861_v26, %v1281_v45  ;;  %v3263_v26 = vld [vmem:[%s4924_s7 + $0x48] sm:$0xff] }
 0x332   :  { %v1875_v6 = vpop.f32.mrf.mxu0 }
 0x333   :  { %v4773_v36 = vmax.f32 %v1846_v43, %v1934_v61  ;;  %v1876_v0 = vadd.f32 %v1875_v6, %v1862_v28  ;;  %v2189_v43 = vsel %vm641_vm3, %v2173_v4, 0  ;;  %v3256_v61 = vld [vmem:[%s4924_s7 + $0x10] sm:$0xff]  ;;  %v3262_v6 = vld [vmem:[%s4924_s7 + $0x40] sm:$0xff] }
 0x334   :  { %v1833_v46 = vpop.f32.mrf.mxu2 }
 0x335   :  { %v1834_v49 = vadd.f32 %v1833_v46, %v1820_v44  ;;  %v1847_v47 = vpop.f32.mrf.mxu3  ;;  %v1984_v20 = vmul.f32 %v4773_v36, %v4773_v36  ;;  %v3257_v46 = vld [vmem:[%s4924_s7 + $0x18] sm:$0xff] }
 0x337   :  { %v1848_v10 = vadd.f32 %v1847_v47, %v1834_v49 }
 0x338   :  { %v1915_v35 = vpop.f32.mrf.mxu1 }
 0x339   :  { %v1936_v23 = vmul.f32 0.01, %v1848_v10 }
 0x33a   :  { %v1929_v37 = vpop.f32.mrf.mxu0 }
 0x33b   :  { %v4775_v58 = vmax.f32 %v1848_v10, %v1936_v23 }
 0x33d   :  { %v1986_v24 = vmul.f32 %v4775_v58, %v4775_v58  ;;  %v1887_v59 = vpop.f32.mrf.mxu2  ;;  %1956 = vmatpush.msra.mxu2 %v4775_v58 }
 0x33e   :  { %v1888_v38 = vadd.f32 %v1887_v59, %v1874_v9  ;;  %v1901_v29 = vpop.f32.mrf.mxu3  ;;  %v3254_v59 = vld [vmem:[%s4924_s7] sm:$0xff] }
 0x33f   :  { %1957 = vmatpush.msra.mxu2 %v4773_v36  ;;  %2002 = vmatpush.msra.mxu1 %v1986_v24 }
 0x340   :  { %v1902_v42 = vadd.f32 %v1901_v29, %v1888_v38  ;;  %3046 = vmatmul.msk.f32.vlgmr.msra.gmra.mxu2 %vm261_vm2, %v3312_v2  ;;  %v1917_v17 = vpop.f32.mrf.mxu1 }
 0x341   :  { %2003 = vmatpush.msra.mxu1 %v1984_v20  ;;  %2191 = vmatpush.bf16.msrb.mxu2 %v3261_v27 }
 0x342   :  { %3048 = vmatmul.msk.f32.vlgmr.msra.gmra.mxu1 %vm261_vm2, %v3312_v2  ;;  %v1916_v15 = vadd.f32 %v1915_v35, %v1902_v42  ;;  %v1931_v1 = vpop.f32.mrf.mxu0 }
 0x344   :  { %v1930_v52 = vadd.f32 %v1929_v37, %v1916_v15 }
 0x345   :  { %v1889_v50 = vpop.f32.mrf.mxu2  ;;  %2192 = vmatpush.bf16.msrb.mxu2 %v3260_v18 }
 0x346   :  { %v1890_v51 = vadd.f32 %v1889_v50, %v1876_v0  ;;  %v1903_v13 = vpop.f32.mrf.mxu3  ;;  %v1935_v30 = vmul.f32 0.01, %v1930_v52 }
 0x348   :  { %v1904_v48 = vadd.f32 %v1903_v13, %v1890_v51  ;;  %v4789_v12 = vmax.f32 %v1930_v52, %v1935_v30 }
 0x349   :  { %2193 = vmatpush.bf16.msrb.mxu2 %v3259_v33 }
 0x34a   :  { %v1918_v53 = vadd.f32 %v1917_v17, %v1904_v48  ;;  %v1985_v5 = vmul.f32 %v4789_v12, %v4789_v12 }
 0x34c   :  { %v1932_v63 = vadd.f32 %v1931_v1, %v1918_v53 }
 0x34d   :  { %2194 = vmatpush.bf16.msrb.mxu2 %v3258_v54 }
 0x34e   :  { %v1937_v57 = vmul.f32 0.01, %v1932_v63 }
 0x350   :  { %v4787_v3 = vmax.f32 %v1932_v63, %v1937_v57 }
 0x351   :  { %2195 = vmatpush.bf16.msrb.mxu2 %v3257_v46 }
 0x352   :  { %1976 = vmatpush.msra.mxu3 %v4787_v3  ;;  %v1987_v22 = vmul.f32 %v4787_v3, %v4787_v3 }
 0x354   :  { %1977 = vmatpush.msra.mxu3 %v4789_v12  ;;  %2022 = vmatpush.msra.mxu0 %v1987_v22 }
 0x355   :  { %3047 = vmatmul.msk.f32.vlgmr.msra.gmra.mxu3 %vm261_vm2, %v3312_v2  ;;  %2196 = vmatpush.bf16.msrb.mxu2 %v3256_v61 }
 0x356   :  { %2023 = vmatpush.msra.mxu0 %v1985_v5  ;;  %2210 = vmatpush.bf16.msrb.mxu3 %v2189_v43 }
 0x357   :  { %3049 = vmatmul.msk.f32.vlgmr.msra.gmra.mxu0 %vm261_vm2, %v3312_v2 }
 0x359   :  { %2197 = vmatpush.bf16.msrb.mxu2 %v3255_v16  ;;  %v3268_v16 = vld [vmem:[%s4926_s9 + $0x20] sm:$0xff] }
 0x35a   :  { %2211 = vmatpush.bf16.msrb.mxu3 %v3263_v26  ;;  %v3123_v26 = vld [vmem:[%s4926_s9 + $0x38] sm:$0xf] }
 0x35d   :  { %2198 = vmatpush.bf16.msrb.mxu2 %v3254_v59 }
 0x35e   :  { %2212 = vmatpush.bf16.msrb.mxu3 %v3262_v6  ;;  %v3270_v6 = vld [vmem:[%s4926_s9 + $0x30] sm:$0xff] }
 0x3bf   :  { %v2005_v21 = vpop.f32.mrf.mxu1 }
 0x3c0   :  { %v2028_v11 = vmul.f32 0.0625, %v2005_v21 }
 0x3c3   :  { %v1959_v14 = vpop.f32.mrf.mxu2 }
 0x3c4   :  { %v4801_v19 = vmul.f32 0.0625, %v1959_v14 }
 0x3c6   :  { %v2030_v7 = vmul.f32 %v4801_v19, %v4801_v19 }
 0x3c8   :  { %v2032_v60 = vsub.f32 %v2028_v11, %v2030_v7 }
 0x3ca   :  { %v2034_v62 = vmax.f32 %v2032_v60, 0.0 }
 0x3cc   :  { %v2036_v55 = vadd.f32 1e-05, %v2034_v62 }
 0x3ce   :  { %3292 = vrsqrt.f32 %v2036_v55  ;;  %vm2044_vm5 = vweird.f32 %v2036_v55 }
 0x3d4   :  { %v2025_v31 = vpop.f32.mrf.mxu0  ;;  %v3293_v44 = vpop.eup %3292 }
 0x3d5   :  { %v2029_v40 = vmul.f32 0.0625, %v2025_v31  ;;  %v2039_v47 = vmul.f32 %v3293_v44, %v2036_v55  ;;  %vm2045_vm6 = vweird.f32 %v3293_v44 }
 0x3d6   :  { %vm2046_vm8 = vmor %vm2044_vm5, %vm2045_vm6 }
 0x3d7   :  { %v2040_v10 = vmul.f32 %v3293_v44, %v2039_v47 }
 0x3d8   :  { %v1979_v32 = vpop.f32.mrf.mxu3 }
 0x3d9   :  { %v1983_v39 = vmul.f32 0.0625, %v1979_v32  ;;  %v2041_v9 = vmul.f32 0.5, %v2040_v10  ;;  %v3269_v10 = vld [vmem:[%s4926_s9 + $0x28] sm:$0xff] }
 0x3db   :  { %v2031_v25 = vmul.f32 %v1983_v39, %v1983_v39  ;;  %v2042_v29 = vsub.f32 1.5, %v2041_v9 }
 0x3dd   :  { %v2033_v8 = vsub.f32 %v2029_v40, %v2031_v25  ;;  %v2043_v28 = vmul.f32 %v3293_v44, %v2042_v29 }
 0x3df   :  { %v2035_v45 = vmax.f32 %v2033_v8, 0.0  ;;  %v2047_v15 = vsel %vm2046_vm8, %v3293_v44, %v2043_v28 }
 0x3e1   :  { %v2037_v49 = vadd.f32 1e-05, %v2035_v45 }
 0x3e3   :  { %3294 = vrsqrt.f32 %v2037_v49  ;;  %vm2054_vm9 = vweird.f32 %v2037_v49 }
 0x3e9   :  { %v3295_v23 = vpop.eup %3294 }
 0x3ea   :  { %v2049_v24 = vmul.f32 %v3295_v23, %v2037_v49  ;;  %vm2055_vm12 = vweird.f32 %v3295_v23  ;;  %v3271_v49 = vld [vmem:[%s4926_s9 + $0x38] sm:$0x70] }
 0x3eb   :  { %vm2056_vm10 = vmor %vm2054_vm9, %vm2055_vm12  ;;  %v3124_v47 = vor.u32 %v3271_v49, %v3123_v26 }
 0x3ec   :  { %v2050_v38 = vmul.f32 %v3295_v23, %v2049_v24  ;;  %v3267_v24 = vld [vmem:[%s4926_s9 + $0x18] sm:$0xff] }
 0x3ed   :  { %v2371_v61 = vsel %vm2369_vm11, %v3124_v47, 0 }
 0x3ee   :  { %v2051_v35 = vmul.f32 0.5, %v2050_v38  ;;  %2373 = vmatpush.bf16.msra.mxu3 %v2371_v61  ;;  %v3272_v61 = vld [vmem:[%s4929_s11] sm:$0xff] }
 0x3f0   :  { %v2052_v20 = vsub.f32 1.5, %v2051_v35 }
 0x3f2   :  { %v2053_v42 = vmul.f32 %v3295_v23, %v2052_v20  ;;  %2374 = vmatpush.bf16.msra.mxu3 %v3270_v6  ;;  %v3266_v20 = vld [vmem:[%s4926_s9 + $0x10] sm:$0xff] }
 0x3f4   :  { %v2057_v37 = vsel %vm2056_vm10, %v3295_v23, %v2053_v42  ;;  %v3265_v42 = vld [vmem:[%s4926_s9 + $0x8] sm:$0xff] }
 0x3f5   :  { %v2060_v0 = vrot.slane %v2057_v37, 4 }
 0x3f6   :  { %2375 = vmatpush.bf16.msra.mxu3 %v3269_v10 }
 0x3f7   :  { %v2061_v50 = vsel %vm641_vm3, %v2047_v15, %v2060_v0  ;;  %v3264_v0 = vld [vmem:[%s4926_s9] sm:$0xff] }
 0x3f8   :  { %v2062_v51 = vrot.slane %v2061_v50, 7 }
 0x3fa   :  { %v2064_v13 = vmul.f32 %v2062_v51, %v4769_v56  ;;  %2376 = vmatpush.bf16.msra.mxu3 %v3268_v16 }
 0x3fc   :  { %v2066_v52 = vperm.slane %v2064_v13, 1  ;;  %v2067_v48 = vperm.slane %v2064_v13, 5 }
 0x3fe   :  { %v2071_v17 = vmul.f32 %v2067_v48, %v1983_v39  ;;  %v2070_v53 = vmul.f32 %v2066_v52, %v4801_v19  ;;  %v2079_v57 = vperm.slane %v2066_v52, 1  ;;  %v2080_v5 = vperm.slane %v2067_v48, 1  ;;  %2377 = vmatpush.bf16.msra.mxu3 %v3267_v24 }
 0x400   :  { %v2074_v1 = vrot.slane %v2071_v17, 4  ;;  %v2081_v7 = vmul.f32 %v2079_v57, %v4773_v36  ;;  %v2083_v11 = vmul.f32 %v2079_v57, %v4775_v58  ;;  %v2082_v62 = vmul.f32 %v2080_v5, %v4789_v12  ;;  %v4851_v36 = vld [vmem:[%s4925_s8] sm:$0x7] }
 0x401   :  { %v2084_v27 = vmul.f32 %v2080_v5, %v4787_v3  ;;  %v2120_v58 = vperm.slane %v4851_v36, 0 }
 0x402   :  { %v2075_v63 = vsel %vm641_vm3, %v2070_v53, %v2074_v1  ;;  %vm2184_vm3 = vcmask 326656   ;;  %2378 = vmatpush.bf16.msra.mxu3 %v3266_v20 }
 0x403   :  { %v2076_v30 = vrot.slane %v2075_v63, 6 }
 0x405   :  { %v2078_v22 = vsub.f32 %v4769_v56, %v2076_v30 }
 0x406   :  { %2379 = vmatpush.bf16.msra.mxu3 %v3265_v42 }
 0x407   :  { %v2086_v14 = vperm.slane %v2078_v22, 2  ;;  %v2087_v21 = vperm.slane %v2078_v22, 6 }
 0x409   :  { %v2090_v60 = vperm.slane %v2086_v14, 2  ;;  %v2091_v19 = vperm.slane %v2087_v21, 2 }
 0x40a   :  { %2380 = vmatpush.bf16.msra.mxu3 %v3264_v0 }
 0x40b   :  { %v2092_v55 = vadd.f32 %v2090_v60, %v2081_v7  ;;  %v2094_v18 = vadd.f32 %v2090_v60, %v2083_v11  ;;  %v2093_v31 = vadd.f32 %v2091_v19, %v2082_v62  ;;  %v2095_v32 = vadd.f32 %v2091_v19, %v2084_v27  ;;  %v2299_v19 = vld [vmem:[%s4927_s10] sm:$0x7] }
 0x40c   :  { %v3313_v27 = vmov 42  }
 0x40d   :  { %v2096_v33 = vpack.c.bf16 %v2094_v18, %v2092_v55  ;;  %v2097_v56 = vpack.c.bf16 %v2095_v32, %v2093_v31  ;;  %3277 = vset.pattern.permute.xlu2 %v3313_v27  ;;  %3278 = vset.pattern.permute.xlu0 %v3313_v27  ;;  %v2317_v55 = vperm.slane %v2299_v19, 0 }
 0x40f   :  { %2199 = vmatmul.bf16.vlgmr.msrb.gmra.mxu2 %v2096_v33  ;;  %3090 = vmatmul.msk.bf16.vlgmr.msrb.gmra.mxu3 %vm2184_vm3, %v2097_v56 }
 0x492   :  { %v2200_v12 = vpop.f32.mrf.mxu2  ;;  %v2214_v39 = vpop.f32.mrf.mxu3 }
 0x493   :  { %v2201_v3 = vadd.f32 %v2200_v12, %v2120_v58 }
 0x495   :  { %v2215_v40 = vadd.f32 %v2214_v39, %v2201_v3 }
 0x497   :  { %v2219_v54 = vmul.f32 0.01, %v2215_v40 }
 0x499   :  { %v2221_v43 = vmax.f32 %v2215_v40, %v2219_v54 }
 0x49a   :  { %v2202_v41 = vpop.f32.mrf.mxu2  ;;  %v2216_v25 = vpop.f32.mrf.mxu3 }
 0x49b   :  { %v2203_v34 = vadd.f32 %v2202_v41, %v2120_v58  ;;  %v2244_v46 = vmul.f32 %v2221_v43, %v2221_v43 }
 0x49d   :  { %v2217_v4 = vadd.f32 %v2216_v25, %v2203_v34 }
 0x49f   :  { %v2220_v8 = vmul.f32 0.01, %v2217_v4 }
 0x4a1   :  { %v2222_v44 = vmax.f32 %v2217_v4, %v2220_v8 }
 0x4a3   :  { %v2245_v45 = vmul.f32 %v2222_v44, %v2222_v44  ;;  %2237 = vmatpush.msrb.mxu1 %v2222_v44 }
 0x4a5   :  { %2238 = vmatpush.msrb.mxu1 %v2221_v43  ;;  %2260 = vmatpush.msrb.mxu0 %v2245_v45 }
 0x4a6   :  { %3091 = vmatmul.msk.f32.vlgmr.msrb.gmra.mxu1 %vm261_vm2, %v3312_v2 }
 0x4a7   :  { %2261 = vmatpush.msrb.mxu0 %v2244_v46 }
 0x4a8   :  { %3092 = vmatmul.msk.f32.vlgmr.msrb.gmra.mxu0 %vm261_vm2, %v3312_v2 }
 0x523   :  { %v2240_v23 = vpop.f32.mrf.mxu1 }
 0x524   :  { %v2243_v9 = vmul.f32 0.0625, %v2240_v23 }
 0x525   :  { %v2263_v59 = vpop.f32.mrf.mxu0 }
 0x526   :  { %v2267_v38 = vmul.f32 %v2243_v9, %v2243_v9  ;;  %v2266_v29 = vmul.f32 0.0625, %v2263_v59 }
 0x528   :  { %v2268_v35 = vsub.f32 %v2266_v29, %v2267_v38 }
 0x52a   :  { %v2269_v28 = vmax.f32 %v2268_v35, 0.0 }
 0x52c   :  { %v2270_v37 = vadd.f32 1e-05, %v2269_v28 }
 0x52e   :  { %3296 = vrsqrt.f32 %v2270_v37  ;;  %vm2277_vm14 = vweird.f32 %v2270_v37 }
 0x534   :  { %v3297_v15 = vpop.eup %3296 }
 0x535   :  { %v2272_v50 = vmul.f32 %v3297_v15, %v2270_v37  ;;  %vm2278_vm13 = vweird.f32 %v3297_v15 }
 0x536   :  { %vm2279_vm15 = vmor %vm2277_vm14, %vm2278_vm13 }
 0x537   :  { %v2273_v51 = vmul.f32 %v3297_v15, %v2272_v50 }
 0x539   :  { %v2274_v13 = vmul.f32 0.5, %v2273_v51 }
 0x53b   :  { %v2275_v52 = vsub.f32 1.5, %v2274_v13 }
 0x53d   :  { %v2276_v48 = vmul.f32 %v3297_v15, %v2275_v52 }
 0x53f   :  { %v2280_v17 = vsel %vm2279_vm15, %v3297_v15, %v2276_v48  ;;  %v3279_v48 = vld [vmem:[%s4928_s12] ss:$0 sm:$0xff] }
 0x540   :  { %v2282_v53 = vrot.slane %v2280_v17, 7 }
 0x542   :  { %v2284_v1 = vmul.f32 %v2282_v53, %v4851_v36 }
 0x544   :  { %v2286_v63 = vrot.slane %v2284_v1, 1  ;;  %v2293_v22 = vperm.slane %v2284_v1, 1 }
 0x546   :  { %v2288_v30 = vmul.f32 %v2286_v63, %v2243_v9  ;;  %v2294_v14 = vmul.f32 %v2293_v22, %v2221_v43  ;;  %v2295_v21 = vmul.f32 %v2293_v22, %v2222_v44  ;;  %v3138_v43 = vld [vmem:[%s4929_s11 + $0x10] sm:$0xf]  ;;  %v3274_v44 = vld [vmem:[%s4929_s11 + $0x10] sm:$0x10] }
 0x547   :  { %v3139_v45 = vor.u32 %v3274_v44, %v3138_v43 }
 0x548   :  { %v2290_v57 = vrot.slane %v2288_v30, 6 }
 0x549   :  { %v2501_v26 = vsel %vm158_vm0, %v3139_v45, 0 }
 0x54a   :  { %v2292_v5 = vsub.f32 %v4851_v36, %v2290_v57 }
 0x54c   :  { %v2296_v7 = vperm.slane %v2292_v5, 2 }
 0x54e   :  { %v2297_v11 = vadd.f32 %v2296_v7, %v2294_v14  ;;  %v2298_v60 = vadd.f32 %v2296_v7, %v2295_v21 }
 0x550   :  { %v2300_v62 = vpack.c.bf16 %v2298_v60, %v2297_v11 }
 0x552   :  { %3125 = vmatmul.msk.bf16.vlgmr.msra.gmra.mxu3 %vm2365_vm4, %v2300_v62  ;;  %v2537_v62 = vlaneseq }
 0x554   :  { %v2538_v27 = vand.u32 127, %v2537_v62 }
 0x5d5   :  { %v2382_v18 = vpop.f32.mrf.mxu3 }
 0x5d6   :  { %v2383_v31 = vadd.f32 %v2382_v18, %v2317_v55 }
 0x5d8   :  { %3298 = vtanh.f32 %v2383_v31  ;;  %v2387_v56 = vmul.f32 0.01, %v2383_v31 }
 0x5da   :  { %v2389_v39 = vmax.f32 %v2383_v31, %v2387_v56 }
 0x5dc   :  { %v2412_v41 = vmul.f32 %v2389_v39, %v2389_v39 }
 0x5dd   :  { %v2384_v32 = vpop.f32.mrf.mxu3 }
 0x5de   :  { %v3299_v33 = vpop.eup %3298  ;;  %v2385_v36 = vadd.f32 %v2384_v32, %v2317_v55 }
 0x5df   :  { %2542 = vperm.xlu2 %3277, %v3299_v33  }
 0x5e0   :  { %v2388_v58 = vmul.f32 0.01, %v2385_v36  ;;  %3300 = vtanh.f32 %v2385_v36 }
 0x5e2   :  { %v2390_v12 = vmax.f32 %v2385_v36, %v2388_v58 }
 0x5e4   :  { %2405 = vmatpush.msra.mxu1 %v2390_v12  ;;  %v2413_v3 = vmul.f32 %v2390_v12, %v2390_v12 }
 0x5e6   :  { %v3301_v40 = vpop.eup %3300  ;;  %2406 = vmatpush.msra.mxu1 %v2389_v39  ;;  %2428 = vmatpush.msra.mxu0 %v2413_v3 }
 0x5e7   :  { %2547 = vperm.xlu2 %3277, %v3301_v40   ;;  %3126 = vmatmul.msk.f32.vlgmr.msra.gmra.mxu1 %vm261_vm2, %v3312_v2 }
 0x5e8   :  { %2429 = vmatpush.msra.mxu0 %v2412_v41  ;;  %2508 = vmatpush.bf16.msrb.mxu1 %v2501_v26 }
 0x5e9   :  { %3127 = vmatmul.msk.f32.vlgmr.msra.gmra.mxu0 %vm261_vm2, %v3312_v2  ;;  %v3273_v2 = vld [vmem:[%s4929_s11 + $0x8] sm:$0xff] }
 0x5ec   :  { %2509 = vmatpush.bf16.msrb.mxu1 %v3273_v2 }
 0x5f0   :  { %2510 = vmatpush.bf16.msrb.mxu1 %v3272_v61 }
 0x639   :  { %v2543_v31 = vpop.permute.xlu2 %2542 }
 0x664   :  { %v2408_v34 = vpop.f32.mrf.mxu1 }
 0x665   :  { %v2411_v25 = vmul.f32 0.0625, %v2408_v34 }
 0x666   :  { %v2431_v54 = vpop.f32.mrf.mxu0 }
 0x667   :  { %v2435_v4 = vmul.f32 %v2411_v25, %v2411_v25  ;;  %v2434_v8 = vmul.f32 0.0625, %v2431_v54 }
 0x669   :  { %v2436_v46 = vsub.f32 %v2434_v8, %v2435_v4 }
 0x66b   :  { %v2437_v49 = vmax.f32 %v2436_v46, 0.0 }
 0x66d   :  { %v2438_v47 = vadd.f32 1e-05, %v2437_v49 }
 0x66f   :  { %3302 = vrsqrt.f32 %v2438_v47  ;;  %vm2445_vm2 = vweird.f32 %v2438_v47 }
 0x675   :  { %v3303_v6 = vpop.eup %3302 }
 0x676   :  { %v2440_v10 = vmul.f32 %v3303_v6, %v2438_v47  ;;  %vm2446_vm0 = vweird.f32 %v3303_v6 }
 0x677   :  { %vm2447_vm7 = vmor %vm2445_vm2, %vm2446_vm0 }
 0x678   :  { %v2441_v16 = vmul.f32 %v3303_v6, %v2440_v10 }
 0x67a   :  { %v2442_v23 = vmul.f32 0.5, %v2441_v16 }
 0x67c   :  { %v2443_v9 = vsub.f32 1.5, %v2442_v23 }
 0x67e   :  { %v2444_v24 = vmul.f32 %v3303_v6, %v2443_v9 }
 0x680   :  { %v2448_v59 = vsel %vm2447_vm7, %v3303_v6, %v2444_v24 }
 0x681   :  { %v2450_v38 = vrot.slane %v2448_v59, 7 }
 0x683   :  { %v2452_v29 = vmul.f32 %v2450_v38, %v2299_v19 }
 0x685   :  { %v2454_v35 = vrot.slane %v2452_v29, 1  ;;  %v2461_v42 = vperm.slane %v2452_v29, 1 }
 0x687   :  { %v2456_v20 = vmul.f32 %v2454_v35, %v2411_v25  ;;  %v2462_v0 = vmul.f32 %v2461_v42, %v2389_v39  ;;  %v2463_v15 = vmul.f32 %v2461_v42, %v2390_v12  ;;  %v2548_v12 = vpop.permute.xlu2 %2547 }
 0x689   :  { %v2458_v28 = vrot.slane %v2456_v20, 6 }
 0x68b   :  { %v2460_v37 = vsub.f32 %v2299_v19, %v2458_v28 }
 0x68d   :  { %v2464_v50 = vperm.slane %v2460_v37, 2 }
 0x68f   :  { %v2465_v51 = vadd.f32 %v2464_v50, %v2462_v0  ;;  %v2466_v13 = vadd.f32 %v2464_v50, %v2463_v15 }
 0x691   :  { %v2469_v52 = vpack.c.bf16 %v2466_v13, %v2465_v51 }
 0x693   :  { %3140 = vmatmul.msk.bf16.vlgmr.msrb.gmra.mxu1 %vm154_vm1, %v2469_v52  ;;  %vm2539_vm1 = vcmp.eq.s32.totalorder %v2538_v27, 7 }
 0x710   :  { %v2512_v17 = vpop.f32.mrf.mxu1 }
 0x711   :  { %v2513_v53 = vadd.f32 %v3279_v48, %v2512_v17 }
 0x713   :  { %2517 = vmax.xlane.f32.xlu0 %v2513_v53 }
 0x718   :  { %v2514_v1 = vpop.f32.mrf.mxu1 }
 0x719   :  { %v2515_v63 = vadd.f32 %v3279_v48, %v2514_v1 }
 0x71b   :  { %2519 = vmax.xlane.f32.xlu0 %v2515_v63 }
 0x786   :  { %v2518_v30 = vpop.xlane.xlu0 %2517 }
 0x787   :  { %v2521_v57 = vsub.f32 %v2513_v53, %v2518_v30 }
 0x789   :  { %v2523_v22 = vmul.f32 1.442695, %v2521_v57 }
 0x78b   :  { %3304 = vpow2.f32 %v2523_v22 }
 0x78e   :  { %v2520_v5 = vpop.xlane.xlu0 %2519 }
 0x78f   :  { %v2522_v14 = vsub.f32 %v2515_v63, %v2520_v5 }
 0x791   :  { %v3305_v21 = vpop.eup %3304  ;;  %v2525_v7 = vmul.f32 1.442695, %v2522_v14 }
 0x792   :  { %2527 = vadd.xlane.f32.xlu1 %v3305_v21 }
 0x793   :  { %3306 = vpow2.f32 %v2525_v7 }
 0x799   :  { %v3307_v11 = vpop.eup %3306 }
 0x79a   :  { %2529 = vadd.xlane.f32.xlu1 %v3307_v11 }
 0x805   :  { %v2528_v60 = vpop.xlane.xlu1 %2527 }
 0x806   :  { %3308 = vlog2.f32 %v2528_v60 }
 0x80c   :  { %v3309_v19 = vpop.eup %3308 }
 0x80d   :  { %v2532_v55 = vmul.f32 0.6931472, %v3309_v19  ;;  %v2530_v18 = vpop.xlane.xlu1 %2529 }
 0x80e   :  { %3310 = vlog2.f32 %v2530_v18 }
 0x80f   :  { %v2535_v32 = vsub.f32 %v2521_v57, %v2532_v55 }
 0x811   :  { %v2550_v33 = vsel %vm2539_vm1, %v2543_v31, %v2535_v32 }
 0x812   :  { %2552 = vst [vmem:[%s4930_s13] sm:$0xff] %v2550_v33 }
 0x814   :  { %v3311_v56 = vpop.eup %3310 }
 0x815   :  { %v2534_v36 = vmul.f32 0.6931472, %v3311_v56 }
 0x817   :  { %v2536_v58 = vsub.f32 %v2522_v14, %v2534_v36 }
 0x819   :  { %v2551_v39 = vsel %vm2539_vm1, %v2548_v12, %v2536_v58 }
 0x81a   :  { %2553 = vst [vmem:[%s4930_s13 + $0x8] sm:$0xff] %v2551_v39 }

</bundles_post_ra>
